<compile_context>
chip_gen: v5e
topology: v5e:2x2
jax: 0.10.0
libtpu: 0.0.40
codegen_flags: <defaults>
</compile_context>

<pallas_src>
import functools

import jax
import jax.numpy as jnp
from jax.experimental import pallas as pl
from jax.experimental.pallas import tpu as pltpu


def _cuca_kernel(x_ref, y_ref, wq_ref, wkv_ref, wo_ref, out_ref, *, inner_len):
    # x_ref/y_ref: (1, C, S) bf16; wq_ref: (S, I) bf16; wkv_ref: (S, I+S) bf16; wo_ref: (S, S) bf16
    x = x_ref[0]                                                          # (C, S) bf16
    y = y_ref[0]                                                          # (C, S) bf16

    # Projections: bf16 operands, f32 accumulation.  kv is a single fused MXU matmul.
    q = jnp.dot(x, wq_ref[...], preferred_element_type=jnp.float32)      # (C, I)   f32
    kv = jnp.dot(y, wkv_ref[...], preferred_element_type=jnp.float32)    # (C, I+S) f32
    k = kv[:, :inner_len]                                                 # (C, I)  lane-aligned slice
    v = kv[:, inner_len:]                                                 # (C, S)  lane-aligned slice

    # F.normalize(dim=-1), eps=1e-12:  x / max(||x||, eps) == x * rsqrt(max(sum(x^2), eps^2))
    eps2 = jnp.float32(1e-24)
    sq = jax.lax.rsqrt(jnp.maximum(jnp.sum(q * q, axis=-1, keepdims=True), eps2))  # (C, 1) f32
    sk = jax.lax.rsqrt(jnp.maximum(jnp.sum(k * k, axis=-1, keepdims=True), eps2))  # (C, 1) f32

    # Keep the channel-attention logits dot on the native bf16 MXU path:
    # fold the k-scale into k's rows (lane broadcast, no relayout) and apply the
    # q-scale on the tiny (C, C) logits afterwards.
    qb = q.astype(jnp.bfloat16)
    kb = (k * sk).astype(jnp.bfloat16)
    s = jax.lax.dot_general(qb, kb, (((1,), (1,)), ((), ())),
                            preferred_element_type=jnp.float32)          # (C, C) f32, = q @ k^T
    s = s * sq

    # Softmax over channels (f32 math; approximate reciprocal on the EUP).
    s = s - jnp.max(s, axis=-1, keepdims=True)
    p = jnp.exp(s)
    p = p * pl.reciprocal(jnp.sum(p, axis=-1, keepdims=True), approx=True)

    # attn @ v, then the output projection -- bf16 MXU operands, f32 accumulation.
    av = jnp.dot(p.astype(jnp.bfloat16), v.astype(jnp.bfloat16),
                 preferred_element_type=jnp.float32)                     # (C, S) f32
    out = jnp.dot(av.astype(jnp.bfloat16), wo_ref[...],
                  preferred_element_type=jnp.float32)                    # (C, S) f32
    out_ref[0] = out.astype(out_ref.dtype)


@jax.jit
def channel_uni_cross_attention(x, y, wq_t, wkv_t, wo_t):
    """x, y: (B, C, H, W) or (B, C, S).  Weights stored transposed: (in, out)."""
    spatial = (x.ndim == 4)
    if spatial:
        B, C, H, W = x.shape
        S = H * W
        x3 = x.reshape(B, C, S)
        y3 = y.reshape(B, C, S)
    else:
        B, C, S = x.shape
        x3, y3 = x, y

    I = wq_t.shape[1]
    assert wq_t.shape == (S, I)
    assert wkv_t.shape == (S, I + S)
    assert wo_t.shape == (S, S)

    # Cheap per-call casts (folded by jit); no per-call weight matmuls remain in the wrapper.
    x3 = x3.astype(jnp.bfloat16)
    y3 = y3.astype(jnp.bfloat16)
    wq_b = wq_t.astype(jnp.bfloat16)
    wkv_b = wkv_t.astype(jnp.bfloat16)
    wo_b = wo_t.astype(jnp.bfloat16)

    kernel = functools.partial(_cuca_kernel, inner_len=I)

    out3 = pl.pallas_call(
        kernel,
        out_shape=jax.ShapeDtypeStruct((B, C, S), jnp.float32),
        grid=(B,),  # one batch element per grid step; both TCs active on v7x
        in_specs=[
            pl.BlockSpec((1, C, S), lambda b: (b, 0, 0)),        # x
            pl.BlockSpec((1, C, S), lambda b: (b, 0, 0)),        # y
            pl.BlockSpec((S, I), lambda b: (0, 0)),              # Wq^T   (resident across steps)
            pl.BlockSpec((S, I + S), lambda b: (0, 0)),          # Wkv^T  (resident across steps)
            pl.BlockSpec((S, S), lambda b: (0, 0)),              # Wo^T   (resident across steps)
        ],
        out_specs=pl.BlockSpec((1, C, S), lambda b: (b, 0, 0)),
        compiler_params=pltpu.CompilerParams(
            dimension_semantics=("parallel",)),
    )(x3, y3, wq_b, wkv_b, wo_b)

    return out3.reshape(B, C, H, W) if spatial else out3


def _reference(x, y, wq_t, wkv_t, wo_t):
    """Pure-JAX f32 reference matching the PyTorch module."""
    B, C, H, W = x.shape
    S = H * W
    I = wq_t.shape[1]
    xf = x.reshape(B, C, S)
    yf = y.reshape(B, C, S)
    q = xf @ wq_t
    kv = yf @ wkv_t
    k, v = kv[..., :I], kv[..., I:]
    q = q / jnp.maximum(jnp.linalg.norm(q, axis=-1, keepdims=True), 1e-12)
    k = k / jnp.maximum(jnp.linalg.norm(k, axis=-1, keepdims=True), 1e-12)
    attn = jax.nn.softmax(q @ jnp.swapaxes(k, -2, -1), axis=-1)
    out = (attn @ v) @ wo_t
    return out.reshape(B, C, H, W)


if __name__ == "__main__":
    B, C, Hs, Ws = 2, 8, 16, 16          # seq_len = Hs*Ws = 256
    S = Hs * Ws
    factor = 2.0
    I = int(S * factor)                  # inner_len = 512 (multiple of 128 -> lane aligned)

    key = jax.random.PRNGKey(0)
    kx, ky, kq, kkv, ko = jax.random.split(key, 5)

    x = jax.random.normal(kx, (B, C, Hs, Ws), dtype=jnp.float32)
    y = jax.random.normal(ky, (B, C, Hs, Ws), dtype=jnp.float32)

    # nn.Linear(in, out, bias=False) weight is (out, in); store transposed (in, out).
    bound = 1.0 / jnp.sqrt(jnp.float32(S))
    wq_t = jax.random.uniform(kq, (S, I), jnp.float32, -bound, bound)
    wkv_t = jax.random.uniform(kkv, (S, I + S), jnp.float32, -bound, bound)
    wo_t = jax.random.uniform(ko, (S, S), jnp.float32, -bound, bound)

    out = channel_uni_cross_attention(x, y, wq_t, wkv_t, wo_t)
    out = jax.block_until_ready(out)

    ref = _reference(x, y, wq_t, wkv_t, wo_t)
    assert out.shape == (B, C, Hs, Ws)
    rel_err = jnp.linalg.norm(out - ref) / jnp.linalg.norm(ref)
    assert rel_err < 3e-2, f"relative error vs reference too large: {rel_err}"

    print("KERNEL_OK")
</pallas_src>

<mosaic_0001>
module attributes {stable_mosaic.version = 11 : i64} {
  func.func @_cuca_kernel(%arg0: i32, %arg1: memref<1x8x256xbf16, #tpu.memory_space<vmem>>, %arg2: memref<1x8x256xbf16, #tpu.memory_space<vmem>>, %arg3: memref<256x512xbf16, #tpu.memory_space<vmem>>, %arg4: memref<256x768xbf16, #tpu.memory_space<vmem>>, %arg5: memref<256x256xbf16, #tpu.memory_space<vmem>>, %arg6: memref<1x8x256xf32, #tpu.memory_space<vmem>>) attributes {dimension_semantics = [#tpu.dimension_semantics<parallel>], iteration_bounds = array<i64: 2>, scalar_prefetch = 0 : i64, scratch_operands = 0 : i64, tpu.core_type = #tpu.core_type<tc>, window_params = [{transform_indices = @transform_0, window_bounds = array<i64: 1, 8, 256>}, {transform_indices = @transform_1, window_bounds = array<i64: 1, 8, 256>}, {pipeline_mode = #tpu.pipeline_mode<synchronous>, transform_indices = @transform_2, window_bounds = array<i64: 256, 512>}, {pipeline_mode = #tpu.pipeline_mode<synchronous>, transform_indices = @transform_3, window_bounds = array<i64: 256, 768>}, {pipeline_mode = #tpu.pipeline_mode<synchronous>, transform_indices = @transform_4, window_bounds = array<i64: 256, 256>}, {transform_indices = @transform_5, window_bounds = array<i64: 1, 8, 256>}]} {
    %c0 = arith.constant 0 : index
    %c0_0 = arith.constant 0 : index
    %c0_1 = arith.constant 0 : index
    %0 = vector.load %arg1[%c0, %c0_0, %c0_1] : memref<1x8x256xbf16, #tpu.memory_space<vmem>>, vector<1x8x256xbf16>
    %1 = vector.shape_cast %0 : vector<1x8x256xbf16> to vector<8x256xbf16>
    %c0_2 = arith.constant 0 : index
    %c0_3 = arith.constant 0 : index
    %c0_4 = arith.constant 0 : index
    %2 = vector.load %arg2[%c0_2, %c0_3, %c0_4] : memref<1x8x256xbf16, #tpu.memory_space<vmem>>, vector<1x8x256xbf16>
    %3 = vector.shape_cast %2 : vector<1x8x256xbf16> to vector<8x256xbf16>
    %c0_5 = arith.constant 0 : index
    %c0_6 = arith.constant 0 : index
    %4 = vector.load %arg3[%c0_5, %c0_6] : memref<256x512xbf16, #tpu.memory_space<vmem>>, vector<256x512xbf16>
    %cst = arith.constant dense<0.000000e+00> : vector<8x512xf32>
    %5 = tpu.matmul %1, %4, %cst {dimension_numbers = #tpu.dot_dimension_numbers<[1], [0], [0], [1], [0, 0, 1, 1], [], []>} : vector<8x256xbf16>, vector<256x512xbf16>, vector<8x512xf32> -> vector<8x512xf32>
    %c0_7 = arith.constant 0 : index
    %c0_8 = arith.constant 0 : index
    %6 = vector.load %arg4[%c0_7, %c0_8] : memref<256x768xbf16, #tpu.memory_space<vmem>>, vector<256x768xbf16>
    %cst_9 = arith.constant dense<0.000000e+00> : vector<8x768xf32>
    %7 = tpu.matmul %3, %6, %cst_9 {dimension_numbers = #tpu.dot_dimension_numbers<[1], [0], [0], [1], [0, 0, 1, 1], [], []>} : vector<8x256xbf16>, vector<256x768xbf16>, vector<8x768xf32> -> vector<8x768xf32>
    %8 = vector.extract_strided_slice %7 {offsets = [0, 0], sizes = [8, 512], strides = [1, 1]} : vector<8x768xf32> to vector<8x512xf32>
    %9 = vector.extract_strided_slice %7 {offsets = [0, 512], sizes = [8, 256], strides = [1, 1]} : vector<8x768xf32> to vector<8x256xf32>
    %10 = arith.mulf %5, %5 : vector<8x512xf32>
    %cst_10 = arith.constant dense<0.000000e+00> : vector<8xf32>
    %11 = vector.multi_reduction <add>, %10, %cst_10 [1] : vector<8x512xf32> to vector<8xf32>
    %12 = vector.shape_cast %11 : vector<8xf32> to vector<8x1xf32>
    %cst_11 = arith.constant 1.000000e-24 : f32
    %13 = vector.broadcast %cst_11 : f32 to vector<8x1xf32>
    %14 = arith.maximumf %12, %13 : vector<8x1xf32>
    %15 = math.rsqrt %14 : vector<8x1xf32>
    %16 = arith.mulf %8, %8 : vector<8x512xf32>
    %cst_12 = arith.constant dense<0.000000e+00> : vector<8xf32>
    %17 = vector.multi_reduction <add>, %16, %cst_12 [1] : vector<8x512xf32> to vector<8xf32>
    %18 = vector.shape_cast %17 : vector<8xf32> to vector<8x1xf32>
    %cst_13 = arith.constant 1.000000e-24 : f32
    %19 = vector.broadcast %cst_13 : f32 to vector<8x1xf32>
    %20 = arith.maximumf %18, %19 : vector<8x1xf32>
    %21 = math.rsqrt %20 : vector<8x1xf32>
    %22 = arith.truncf %5 : vector<8x512xf32> to vector<8x512xbf16>
    %23 = vector.broadcast %21 : vector<8x1xf32> to vector<8x512xf32>
    %24 = arith.mulf %8, %23 : vector<8x512xf32>
    %25 = arith.truncf %24 : vector<8x512xf32> to vector<8x512xbf16>
    %cst_14 = arith.constant dense<0.000000e+00> : vector<8x8xf32>
    %26 = tpu.matmul %22, %25, %cst_14 {dimension_numbers = #tpu.dot_dimension_numbers<[1], [1], [0], [0], [0, 0, 1, 0], [], []>} : vector<8x512xbf16>, vector<8x512xbf16>, vector<8x8xf32> -> vector<8x8xf32>
    %27 = vector.broadcast %15 : vector<8x1xf32> to vector<8x8xf32>
    %28 = arith.mulf %26, %27 : vector<8x8xf32>
    %cst_15 = arith.constant dense<0xFF800000> : vector<8xf32>
    %29 = vector.multi_reduction <maximumf>, %28, %cst_15 [1] : vector<8x8xf32> to vector<8xf32>
    %30 = vector.shape_cast %29 : vector<8xf32> to vector<8x1xf32>
    %31 = vector.broadcast %30 : vector<8x1xf32> to vector<8x8xf32>
    %32 = arith.subf %28, %31 : vector<8x8xf32>
    %33 = math.exp %32 : vector<8x8xf32>
    %cst_16 = arith.constant dense<0.000000e+00> : vector<8xf32>
    %34 = vector.multi_reduction <add>, %33, %cst_16 [1] : vector<8x8xf32> to vector<8xf32>
    %35 = vector.shape_cast %34 : vector<8xf32> to vector<8x1xf32>
    %36 = tpu.reciprocal %35 {approx = true} : vector<8x1xf32> -> vector<8x1xf32>
    %37 = vector.broadcast %36 : vector<8x1xf32> to vector<8x8xf32>
    %38 = arith.mulf %33, %37 : vector<8x8xf32>
    %39 = arith.truncf %38 : vector<8x8xf32> to vector<8x8xbf16>
    %40 = arith.truncf %9 : vector<8x256xf32> to vector<8x256xbf16>
    %cst_17 = arith.constant dense<0.000000e+00> : vector<8x256xf32>
    %41 = tpu.matmul %39, %40, %cst_17 {dimension_numbers = #tpu.dot_dimension_numbers<[1], [0], [0], [1], [0, 0, 1, 1], [], []>} : vector<8x8xbf16>, vector<8x256xbf16>, vector<8x256xf32> -> vector<8x256xf32>
    %42 = arith.truncf %41 : vector<8x256xf32> to vector<8x256xbf16>
    %c0_18 = arith.constant 0 : index
    %c0_19 = arith.constant 0 : index
    %43 = vector.load %arg5[%c0_18, %c0_19] : memref<256x256xbf16, #tpu.memory_space<vmem>>, vector<256x256xbf16>
    %cst_20 = arith.constant dense<0.000000e+00> : vector<8x256xf32>
    %44 = tpu.matmul %42, %43, %cst_20 {dimension_numbers = #tpu.dot_dimension_numbers<[1], [0], [0], [1], [0, 0, 1, 1], [], []>} : vector<8x256xbf16>, vector<256x256xbf16>, vector<8x256xf32> -> vector<8x256xf32>
    %c0_21 = arith.constant 0 : index
    %c0_22 = arith.constant 0 : index
    %c0_23 = arith.constant 0 : index
    %45 = vector.load %arg6[%c0_21, %c0_22, %c0_23] : memref<1x8x256xf32, #tpu.memory_space<vmem>>, vector<1x8x256xf32>
    %46 = vector.shape_cast %45 : vector<1x8x256xf32> to vector<8x256xf32>
    %47 = vector.shape_cast %44 : vector<8x256xf32> to vector<1x8x256xf32>
    tpu.vector_store %arg6[%c0_21, %c0_22, %c0_23], %47 {strides = array<i32>} : memref<1x8x256xf32, #tpu.memory_space<vmem>>, vector<1x8x256xf32>,
    return
  }
  func.func @transform_0(%arg0: i32) -> (i32, i32, i32) {
    %c0_i32 = arith.constant 0 : i32
    %c0_i32_0 = arith.constant 0 : i32
    %c0_i32_1 = arith.constant 0 : i32
    return %arg0, %c0_i32, %c0_i32_0 : i32, i32, i32
  }
  func.func @transform_1(%arg0: i32) -> (i32, i32, i32) {
    %c0_i32 = arith.constant 0 : i32
    %c0_i32_0 = arith.constant 0 : i32
    %c0_i32_1 = arith.constant 0 : i32
    return %arg0, %c0_i32, %c0_i32_0 : i32, i32, i32
  }
  func.func @transform_2(%arg0: i32) -> (i32, i32) {
    %c0_i32 = arith.constant 0 : i32
    %c0_i32_0 = arith.constant 0 : i32
    %c0_i32_1 = arith.constant 0 : i32
    return %c0_i32, %c0_i32_0 : i32, i32
  }
  func.func @transform_3(%arg0: i32) -> (i32, i32) {
    %c0_i32 = arith.constant 0 : i32
    %c0_i32_0 = arith.constant 0 : i32
    %c0_i32_1 = arith.constant 0 : i32
    return %c0_i32, %c0_i32_0 : i32, i32
  }
  func.func @transform_4(%arg0: i32) -> (i32, i32) {
    %c0_i32 = arith.constant 0 : i32
    %c0_i32_0 = arith.constant 0 : i32
    %c0_i32_1 = arith.constant 0 : i32
    return %c0_i32, %c0_i32_0 : i32, i32
  }
  func.func @transform_5(%arg0: i32) -> (i32, i32, i32) {
    %c0_i32 = arith.constant 0 : i32
    %c0_i32_0 = arith.constant 0 : i32
    %c0_i32_1 = arith.constant 0 : i32
    return %arg0, %c0_i32, %c0_i32_0 : i32, i32, i32
  }
}

</mosaic_0001>

<bundles_post_ra>
// kernel: channel_uni_cross_attention.1
= control target key start
LH: loop header
LB: loop body
LE: loop exit
PB: predicated region body
PF: predicated region fallthrough
CT: control target
= control target key end

     0   :  { %s2985_s18 = smov 0   ;;  %s4252_s0 = inlined_call_operand.vmem [shape: bf16[2,8,256], index: 0, kind: input, shape index: {}]   ;;  %s4253_s1 = inlined_call_operand.vmem [shape: bf16[2,8,256], index: 1, kind: input, shape index: {}]   ;;  %s4254_s2 = inlined_call_operand.vmem [shape: bf16[256,512], index: 2, kind: input, shape index: {}]   ;;  %s4255_s3 = inlined_call_operand.vmem [shape: bf16[256,768], index: 3, kind: input, shape index: {}]   ;;  %s4256_s4 = inlined_call_operand.vmem [shape: bf16[256,256], index: 4, kind: input, shape index: {}]   ;;  %s4257_s5 = inlined_call_operand.vmem [shape: f32[2,8,256], index: 5, kind: output, shape index: {}]  }
   0x1 LB: > { %s1953_s19 = sadd.s32 4294967295, %s2953_s18   ;;  %p1957_p0 = scmp.ge.s32.totalorder %s2953_s18, 1  ;;  %s2953_s18 = sphi %s2985_s18, %s15_s18  }
   0x2   : > { %p197_p1 = scmp.lt.s32.totalorder %s2953_s18, 3 }
   0x4   : > { %p198_p2 = pnand %p1957_p0, %p197_p1 }
   0x5   : > { %p230_p3 = scmp.lt.s32.totalorder (!%p198_p2), %s1953_s19, 1 }
   0x6   : > { %201 = sbr.rel (%p198_p2) target bundleno = 1091 (0x443), region = 40 }
   0xb   : > { %v2078_v0 = vld [vmem:[%s4254_s2 + $0xe0] sm:$0xf]  ;;  %v2769_v1 = vld [vmem:[%s4254_s2 + $0xec] sm:$0xf0]  ;;  %v2767_v5 = vld [vmem:[%s4254_s2 + $0xe4] sm:$0xf] }
   0xc   : > { %v2206_v2 = vld [vmem:[%s4254_s2 + $0x1e0] sm:$0xf]  ;;  %v2079_v3 = vor.u32 %v2769_v1, %v2078_v0  ;;  %v2801_v4 = vld [vmem:[%s4254_s2 + $0x1ec] sm:$0xf0]  ;;  %v2080_v6 = vld [vmem:[%s4254_s2 + $0xf0] sm:$0xf0] }
   0xd   : > { %v2207_v7 = vor.u32 %v2801_v4, %v2206_v2  ;;  %v2083_v8 = vor.u32 %v2767_v5, %v2080_v6  ;;  %v2799_v9 = vld [vmem:[%s4254_s2 + $0x1e4] sm:$0xf]  ;;  %v2208_v10 = vld [vmem:[%s4254_s2 + $0x1f0] sm:$0xf0]  ;;  %v2062_v11 = vld [vmem:[%s4254_s2 + $0xc0] sm:$0xf] }
   0xe   : > { %639 = vmatpush.bf16.msra.mxu0 %v2079_v3  ;;  %v2211_v12 = vor.u32 %v2799_v9, %v2208_v10  ;;  %v2765_v13 = vld [vmem:[%s4254_s2 + $0xcc] sm:$0xf0]  ;;  %v2190_v14 = vld [vmem:[%s4254_s2 + $0x1c0] sm:$0xf]  ;;  %v2763_v18 = vld [vmem:[%s4254_s2 + $0xc4] sm:$0xf] }
   0xf   : > { %v2797_v15 = vld [vmem:[%s4254_s2 + $0x1cc] sm:$0xf0]  ;;  %652 = vmatpush.bf16.msra.mxu1 %v2207_v7  ;;  %665 = vmatpush.bf16.msra.mxu2 %v2083_v8  ;;  %v2063_v16 = vor.u32 %v2765_v13, %v2062_v11  ;;  %v2064_v19 = vld [vmem:[%s4254_s2 + $0xd0] sm:$0xf0]  ;;  %v2795_v20 = vld [vmem:[%s4254_s2 + $0x1c4] sm:$0xf] }
  0x10   : > { %v2191_v17 = vor.u32 %v2797_v15, %v2190_v14  ;;  %678 = vmatpush.bf16.msra.mxu3 %v2211_v12  ;;  %v2067_v21 = vor.u32 %v2763_v18, %v2064_v19  ;;  %v2192_v22 = vld [vmem:[%s4254_s2 + $0x1d0] sm:$0xf0]  ;;  %v2046_v23 = vld [vmem:[%s4254_s2 + $0xa0] sm:$0xf]  ;;  %v2761_v24 = vld [vmem:[%s4254_s2 + $0xac] sm:$0xf0] }
  0x11   : > { %v2195_v25 = vor.u32 %v2795_v20, %v2192_v22  ;;  %v2174_v26 = vld [vmem:[%s4254_s2 + $0x1a0] sm:$0xf]  ;;  %v2793_v27 = vld [vmem:[%s4254_s2 + $0x1ac] sm:$0xf0]  ;;  %v2759_v28 = vld [vmem:[%s4254_s2 + $0xa4] sm:$0xf]  ;;  %v2047_v29 = vor.u32 %v2761_v24, %v2046_v23 }
  0x12   : > { %640 = vmatpush.bf16.msra.mxu0 %v2063_v16  ;;  %v2048_v30 = vld [vmem:[%s4254_s2 + $0xb0] sm:$0xf0]  ;;  %v2791_v31 = vld [vmem:[%s4254_s2 + $0x1a4] sm:$0xf]  ;;  %v2175_v33 = vor.u32 %v2793_v27, %v2174_v26  ;;  %v2030_v35 = vld [vmem:[%s4254_s2 + $0x80] sm:$0xf] }
  0x13   : > { %v2176_v32 = vld [vmem:[%s4254_s2 + $0x1b0] sm:$0xf0]  ;;  %653 = vmatpush.bf16.msra.mxu1 %v2191_v17  ;;  %666 = vmatpush.bf16.msra.mxu2 %v2067_v21  ;;  %v2051_v34 = vor.u32 %v2759_v28, %v2048_v30  ;;  %v2757_v36 = vld [vmem:[%s4254_s2 + $0x8c] sm:$0xf0]  ;;  %v2158_v37 = vld [vmem:[%s4254_s2 + $0x180] sm:$0xf] }
  0x14   : > { %679 = vmatpush.bf16.msra.mxu3 %v2195_v25  ;;  %v2179_v38 = vor.u32 %v2791_v31, %v2176_v32  ;;  %v2789_v39 = vld [vmem:[%s4254_s2 + $0x18c] sm:$0xf0]  ;;  %v2755_v40 = vld [vmem:[%s4254_s2 + $0x84] sm:$0xf]  ;;  %v2032_v41 = vld [vmem:[%s4254_s2 + $0x90] sm:$0xf0]  ;;  %v2031_v44 = vor.u32 %v2757_v36, %v2030_v35 }
  0x15   : > { %v2787_v42 = vld [vmem:[%s4254_s2 + $0x184] sm:$0xf]  ;;  %v2160_v43 = vld [vmem:[%s4254_s2 + $0x190] sm:$0xf0]  ;;  %v2159_v45 = vor.u32 %v2789_v39, %v2158_v37  ;;  %v2035_v46 = vor.u32 %v2755_v40, %v2032_v41  ;;  %v2014_v47 = vld [vmem:[%s4254_s2 + $0x60] sm:$0xf] }
  0x16   : > { %641 = vmatpush.bf16.msra.mxu0 %v2047_v29  ;;  %v2753_v48 = vld [vmem:[%s4254_s2 + $0x6c] sm:$0xf0]  ;;  %v2142_v49 = vld [vmem:[%s4254_s2 + $0x160] sm:$0xf]  ;;  %v2163_v50 = vor.u32 %v2787_v42, %v2160_v43  ;;  %v2751_v52 = vld [vmem:[%s4254_s2 + $0x64] sm:$0xf] }
  0x17   : > { %654 = vmatpush.bf16.msra.mxu1 %v2175_v33  ;;  %667 = vmatpush.bf16.msra.mxu2 %v2051_v34  ;;  %v2785_v51 = vld [vmem:[%s4254_s2 + $0x16c] sm:$0xf0]  ;;  %v2016_v53 = vld [vmem:[%s4254_s2 + $0x70] sm:$0xf0]  ;;  %v2783_v54 = vld [vmem:[%s4254_s2 + $0x164] sm:$0xf]  ;;  %v2015_v56 = vor.u32 %v2753_v48, %v2014_v47 }
  0x18   : > { %680 = vmatpush.bf16.msra.mxu3 %v2179_v38  ;;  %v2144_v55 = vld [vmem:[%s4254_s2 + $0x170] sm:$0xf0]  ;;  %v2143_v57 = vor.u32 %v2785_v51, %v2142_v49  ;;  %v2019_v58 = vor.u32 %v2751_v52, %v2016_v53  ;;  %v1998_v59 = vld [vmem:[%s4254_s2 + $0x40] sm:$0xf]  ;;  %v2749_v60 = vld [vmem:[%s4254_s2 + $0x4c] sm:$0xf0] }
  0x19   : > { %v2126_v61 = vld [vmem:[%s4254_s2 + $0x140] sm:$0xf]  ;;  %v2147_v62 = vor.u32 %v2783_v54, %v2144_v55  ;;  %v2781_v63 = vld [vmem:[%s4254_s2 + $0x14c] sm:$0xf0]  ;;  %v2747_v0 = vld [vmem:[%s4254_s2 + $0x44] sm:$0xf]  ;;  %v1999_v4 = vor.u32 %v2749_v60, %v1998_v59 }
  0x1a   : > { %642 = vmatpush.bf16.msra.mxu0 %v2031_v44  ;;  %v2000_v1 = vld [vmem:[%s4254_s2 + $0x50] sm:$0xf0]  ;;  %v2779_v2 = vld [vmem:[%s4254_s2 + $0x144] sm:$0xf]  ;;  %v2127_v5 = vor.u32 %v2781_v63, %v2126_v61  ;;  %v1982_v7 = vld [vmem:[%s4254_s2 + $0x20] sm:$0xf] }
  0x1b   : > { %655 = vmatpush.bf16.msra.mxu1 %v2159_v45  ;;  %668 = vmatpush.bf16.msra.mxu2 %v2035_v46  ;;  %v2128_v3 = vld [vmem:[%s4254_s2 + $0x150] sm:$0xf0]  ;;  %v2003_v6 = vor.u32 %v2747_v0, %v2000_v1  ;;  %v2745_v8 = vld [vmem:[%s4254_s2 + $0x2c] sm:$0xf0]  ;;  %v2110_v9 = vld [vmem:[%s4254_s2 + $0x120] sm:$0xf] }
  0x1c   : > { %681 = vmatpush.bf16.msra.mxu3 %v2163_v50  ;;  %v2131_v10 = vor.u32 %v2779_v2, %v2128_v3  ;;  %v2777_v11 = vld [vmem:[%s4254_s2 + $0x12c] sm:$0xf0]  ;;  %v2743_v12 = vld [vmem:[%s4254_s2 + $0x24] sm:$0xf]  ;;  %v1984_v13 = vld [vmem:[%s4254_s2 + $0x30] sm:$0xf0]  ;;  %v1983_v16 = vor.u32 %v2745_v8, %v1982_v7 }
  0x1d   : > { %v2775_v14 = vld [vmem:[%s4254_s2 + $0x124] sm:$0xf]  ;;  %v2112_v15 = vld [vmem:[%s4254_s2 + $0x130] sm:$0xf0]  ;;  %v1966_v17 = vld [vmem:[%s4254_s2] sm:$0xf]  ;;  %v2111_v19 = vor.u32 %v2777_v11, %v2110_v9  ;;  %v1987_v20 = vor.u32 %v2743_v12, %v1984_v13 }
  0x1e   : > { %643 = vmatpush.bf16.msra.mxu0 %v2015_v56  ;;  %v2741_v18 = vld [vmem:[%s4254_s2 + $0xc] sm:$0xf0]  ;;  %v2094_v21 = vld [vmem:[%s4254_s2 + $0x100] sm:$0xf]  ;;  %v2739_v23 = vld [vmem:[%s4254_s2 + $0x4] sm:$0xf]  ;;  %v2115_v24 = vor.u32 %v2775_v14, %v2112_v15 }
  0x1f   : > { %656 = vmatpush.bf16.msra.mxu1 %v2143_v57  ;;  %669 = vmatpush.bf16.msra.mxu2 %v2019_v58  ;;  %v2773_v22 = vld [vmem:[%s4254_s2 + $0x10c] sm:$0xf0]  ;;  %v1968_v25 = vld [vmem:[%s4254_s2 + $0x10] sm:$0xf0]  ;;  %v2771_v26 = vld [vmem:[%s4254_s2 + $0x104] sm:$0xf]  ;;  %v1967_v31 = vor.u32 %v2741_v18, %v1966_v17 }
  0x20   : > { %682 = vmatpush.bf16.msra.mxu3 %v2147_v62  ;;  %v2096_v27 = vld [vmem:[%s4254_s2 + $0x110] sm:$0xf0]  ;;  %v2086_v28 = vld [vmem:[%s4254_s2 + $0xe8] sm:$0xf]  ;;  %v2770_v29 = vld [vmem:[%s4254_s2 + $0xf4] sm:$0xf0]  ;;  %v2095_v35 = vor.u32 %v2773_v22, %v2094_v21  ;;  %v1971_v36 = vor.u32 %v2739_v23, %v1968_v25 }
  0x21   : > { %v2214_v30 = vld [vmem:[%s4254_s2 + $0x1e8] sm:$0xf]  ;;  %v2802_v32 = vld [vmem:[%s4254_s2 + $0x1f4] sm:$0xf0]  ;;  %v2768_v33 = vld [vmem:[%s4254_s2 + $0xec] sm:$0xf]  ;;  %v2099_v39 = vor.u32 %v2771_v26, %v2096_v27  ;;  %v2087_v40 = vor.u32 %v2770_v29, %v2086_v28 }
  0x22   : > { %644 = vmatpush.bf16.msra.mxu0 %v1999_v4  ;;  %v2088_v34 = vld [vmem:[%s4254_s2 + $0xf8] sm:$0xf0]  ;;  %v2800_v37 = vld [vmem:[%s4254_s2 + $0x1ec] sm:$0xf]  ;;  %v2215_v41 = vor.u32 %v2802_v32, %v2214_v30  ;;  %v2070_v43 = vld [vmem:[%s4254_s2 + $0xc8] sm:$0xf] }
  0x23   : > { %657 = vmatpush.bf16.msra.mxu1 %v2127_v5  ;;  %670 = vmatpush.bf16.msra.mxu2 %v2003_v6  ;;  %v2216_v38 = vld [vmem:[%s4254_s2 + $0x1f8] sm:$0xf0]  ;;  %v2091_v42 = vor.u32 %v2768_v33, %v2088_v34  ;;  %v2766_v44 = vld [vmem:[%s4254_s2 + $0xd4] sm:$0xf0]  ;;  %v2198_v45 = vld [vmem:[%s4254_s2 + $0x1c8] sm:$0xf] }
  0x24   : > { %683 = vmatpush.bf16.msra.mxu3 %v2131_v10  ;;  %v2219_v46 = vor.u32 %v2800_v37, %v2216_v38  ;;  %v2798_v47 = vld [vmem:[%s4254_s2 + $0x1d4] sm:$0xf0]  ;;  %v2764_v48 = vld [vmem:[%s4254_s2 + $0xcc] sm:$0xf]  ;;  %v2072_v49 = vld [vmem:[%s4254_s2 + $0xd8] sm:$0xf0]  ;;  %v2071_v52 = vor.u32 %v2766_v44, %v2070_v43 }
  0x25   : > { %v2796_v50 = vld [vmem:[%s4254_s2 + $0x1cc] sm:$0xf]  ;;  %v2200_v51 = vld [vmem:[%s4254_s2 + $0x1d8] sm:$0xf0]  ;;  %v2054_v53 = vld [vmem:[%s4254_s2 + $0xa8] sm:$0xf]  ;;  %v2199_v54 = vor.u32 %v2798_v47, %v2198_v45  ;;  %v2075_v55 = vor.u32 %v2764_v48, %v2072_v49 }
  0x26   : > { %645 = vmatpush.bf16.msra.mxu0 %v1983_v16  ;;  %v2762_v56 = vld [vmem:[%s4254_s2 + $0xb4] sm:$0xf0]  ;;  %v2182_v57 = vld [vmem:[%s4254_s2 + $0x1a8] sm:$0xf]  ;;  %s4259_s19 = smov (!%p230_p3, %s1953_s19), 1  ;;  %v2203_v58 = vor.u32 %v2796_v50, %v2200_v51  ;;  %vm1605_vm3 = vcmask 1043456  }
  0x27   : > { %658 = vmatpush.bf16.msra.mxu1 %v2111_v19  ;;  %671 = vmatpush.bf16.msra.mxu2 %v1987_v20  ;;  %v2794_v59 = vld [vmem:[%s4254_s2 + $0x1b4] sm:$0xf0]  ;;  %v2760_v60 = vld [vmem:[%s4254_s2 + $0xac] sm:$0xf]  ;;  %v2056_v61 = vld [vmem:[%s4254_s2 + $0xb8] sm:$0xf0]  ;;  %v2055_v0 = vor.u32 %v2762_v56, %v2054_v53 }
  0x28   : > { %684 = vmatpush.bf16.msra.mxu3 %v2115_v24  ;;  %v2792_v62 = vld [vmem:[%s4254_s2 + $0x1ac] sm:$0xf]  ;;  %v2184_v63 = vld [vmem:[%s4254_s2 + $0x1b8] sm:$0xf0]  ;;  %s2736_s10 = sshll.u32 %s4259_s19, 3  ;;  %v2183_v2 = vor.u32 %v2794_v59, %v2182_v57  ;;  %v2059_v3 = vor.u32 %v2760_v60, %v2056_v61  ;;  %vm1587_vm7 = vcmask 64512  }
  0x29   : > { %v2038_v1 = vld [vmem:[%s4254_s2 + $0x88] sm:$0xf]  ;;  %s234_s15 = scalar_lea.vmem %s4252_s0, %s2736_s10  ;;  %v2758_v4 = vld [vmem:[%s4254_s2 + $0x94] sm:$0xf0]  ;;  %v2187_v7 = vor.u32 %v2792_v62, %v2184_v63  ;;  %v2756_v9 = vld [vmem:[%s4254_s2 + $0x8c] sm:$0xf]  ;;  %s239_s16 = scalar_lea.vmem %s4253_s1, %s2736_s10 }
  0x2a   : > { %646 = vmatpush.bf16.msra.mxu0 %v1967_v31  ;;  %v2166_v5 = vld [vmem:[%s4254_s2 + $0x188] sm:$0xf]  ;;  %v246_v6 = vld [vmem:[%s234_s15] sm:$0xff]  ;;  %v2790_v8 = vld [vmem:[%s4254_s2 + $0x194] sm:$0xf0]  ;;  %v2039_v15 = vor.u32 %v2758_v4, %v2038_v1  ;;  %s2738_s21 = sshll.u32 %s4259_s19, 4 }
  0x2b   : > { %659 = vmatpush.bf16.msra.mxu1 %v2095_v35  ;;  %672 = vmatpush.bf16.msra.mxu2 %v1971_v36  ;;  %v2040_v10 = vld [vmem:[%s4254_s2 + $0x98] sm:$0xf0]  ;;  %v313_v11 = vunpack.c.l.b16 %v246_v6  ;;  %v314_v12 = vunpack.c.h.b16 %v246_v6  ;;  %v2788_v13 = vld [vmem:[%s4254_s2 + $0x18c] sm:$0xf]  ;;  %v2167_v18 = vor.u32 %v2790_v8, %v2166_v5  ;;  %v2022_v20 = vld [vmem:[%s4254_s2 + $0x68] sm:$0xf]  ;;  %s244_s24 = scalar_lea.vmem %s4257_s5, %s2738_s21 }
  0x2c   : > { %685 = vmatpush.bf16.msra.mxu3 %v2099_v39  ;;  %v2168_v14 = vld [vmem:[%s4254_s2 + $0x198] sm:$0xf0]  ;;  %v2043_v19 = vor.u32 %v2756_v9, %v2040_v10  ;;  %v2754_v21 = vld [vmem:[%s4254_s2 + $0x74] sm:$0xf0]  ;;  %v2150_v22 = vld [vmem:[%s4254_s2 + $0x168] sm:$0xf] }
  0x2d   : > { %v3293_v16 = vpack.c.b16 %v313_v11, %v313_v11  ;;  %v3295_v17 = vpack.c.b16 %v314_v12, %v314_v12  ;;  %v2171_v23 = vor.u32 %v2788_v13, %v2168_v14  ;;  %v2786_v24 = vld [vmem:[%s4254_s2 + $0x174] sm:$0xf0]  ;;  %v2752_v25 = vld [vmem:[%s4254_s2 + $0x6c] sm:$0xf]  ;;  %v2024_v26 = vld [vmem:[%s4254_s2 + $0x78] sm:$0xf0]  ;;  %v2023_v29 = vor.u32 %v2754_v21, %v2022_v20 }
  0x2e   : > { %691 = vmatpush.bf16.msrb.mxu0 %v2087_v40  ;;  %v2784_v27 = vld [vmem:[%s4254_s2 + $0x16c] sm:$0xf]  ;;  %v2152_v28 = vld [vmem:[%s4254_s2 + $0x178] sm:$0xf0]  ;;  %v2151_v30 = vor.u32 %v2786_v24, %v2150_v22  ;;  %v2027_v31 = vor.u32 %v2752_v25, %v2024_v26  ;;  %v2006_v32 = vld [vmem:[%s4254_s2 + $0x48] sm:$0xf] }
  0x2f   : > { %704 = vmatpush.bf16.msrb.mxu1 %v2215_v41  ;;  %717 = vmatpush.bf16.msrb.mxu2 %v2091_v42  ;;  %v2750_v33 = vld [vmem:[%s4254_s2 + $0x54] sm:$0xf0]  ;;  %v2134_v34 = vld [vmem:[%s4254_s2 + $0x148] sm:$0xf]  ;;  %v2155_v35 = vor.u32 %v2784_v27, %v2152_v28  ;;  %v2748_v37 = vld [vmem:[%s4254_s2 + $0x4c] sm:$0xf] }
  0x30   : > { %730 = vmatpush.bf16.msrb.mxu3 %v2219_v46  ;;  %673 = vmatmul.bf16.vlgmr.msra.gmra.mxu2 %v3293_v16  ;;  %v2782_v36 = vld [vmem:[%s4254_s2 + $0x154] sm:$0xf0]  ;;  %v2008_v38 = vld [vmem:[%s4254_s2 + $0x58] sm:$0xf0]  ;;  %v2780_v39 = vld [vmem:[%s4254_s2 + $0x14c] sm:$0xf]  ;;  %v2007_v41 = vor.u32 %v2750_v33, %v2006_v32 }
  0x31   : > { %686 = vmatmul.bf16.vlgmr.msra.gmra.mxu3 %v3295_v17  ;;  %647 = vmatmul.bf16.vlgmr.msra.gmra.mxu0 %v3293_v16  ;;  %v2136_v40 = vld [vmem:[%s4254_s2 + $0x158] sm:$0xf0]  ;;  %v2135_v42 = vor.u32 %v2782_v36, %v2134_v34  ;;  %v2011_v43 = vor.u32 %v2748_v37, %v2008_v38  ;;  %v1990_v44 = vld [vmem:[%s4254_s2 + $0x28] sm:$0xf]  ;;  %v2746_v45 = vld [vmem:[%s4254_s2 + $0x34] sm:$0xf0] }
  0x32   : > { %692 = vmatpush.bf16.msrb.mxu0 %v2071_v52  ;;  %660 = vmatmul.bf16.vlgmr.msra.gmra.mxu1 %v3295_v17  ;;  %v2118_v46 = vld [vmem:[%s4254_s2 + $0x128] sm:$0xf]  ;;  %v2139_v47 = vor.u32 %v2780_v39, %v2136_v40  ;;  %v2778_v48 = vld [vmem:[%s4254_s2 + $0x134] sm:$0xf0]  ;;  %v2744_v49 = vld [vmem:[%s4254_s2 + $0x2c] sm:$0xf]  ;;  %v1991_v53 = vor.u32 %v2746_v45, %v1990_v44 }
  0x33   : > { %705 = vmatpush.bf16.msrb.mxu1 %v2199_v54  ;;  %718 = vmatpush.bf16.msrb.mxu2 %v2075_v55  ;;  %v1992_v50 = vld [vmem:[%s4254_s2 + $0x38] sm:$0xf0]  ;;  %v2776_v51 = vld [vmem:[%s4254_s2 + $0x12c] sm:$0xf]  ;;  %v1974_v54 = vld [vmem:[%s4254_s2 + $0x8] sm:$0xf]  ;;  %v2119_v56 = vor.u32 %v2778_v48, %v2118_v46 }
  0x34   : > { %731 = vmatpush.bf16.msrb.mxu3 %v2203_v58  ;;  %v2120_v52 = vld [vmem:[%s4254_s2 + $0x138] sm:$0xf0]  ;;  %v2742_v55 = vld [vmem:[%s4254_s2 + $0x14] sm:$0xf0]  ;;  %v1995_v57 = vor.u32 %v2744_v49, %v1992_v50  ;;  %v2102_v58 = vld [vmem:[%s4254_s2 + $0x108] sm:$0xf] }
  0x35   : > { %v2774_v59 = vld [vmem:[%s4254_s2 + $0x114] sm:$0xf0]  ;;  %v2740_v60 = vld [vmem:[%s4254_s2 + $0xc] sm:$0xf]  ;;  %v2123_v61 = vor.u32 %v2776_v51, %v2120_v52  ;;  %v1976_v62 = vld [vmem:[%s4254_s2 + $0x18] sm:$0xf0]  ;;  %v1975_v4 = vor.u32 %v2742_v55, %v1974_v54 }
  0x36   : > { %693 = vmatpush.bf16.msrb.mxu0 %v2055_v0  ;;  %v2772_v63 = vld [vmem:[%s4254_s2 + $0x10c] sm:$0xf]  ;;  %v2104_v0 = vld [vmem:[%s4254_s2 + $0x118] sm:$0xf0]  ;;  %v2390_v1 = vld [vmem:[%s4255_s3 + $0x150] sm:$0xf]  ;;  %v2103_v8 = vor.u32 %v2774_v59, %v2102_v58  ;;  %v1979_v9 = vor.u32 %v2740_v60, %v1976_v62 }
  0x37   : > { %706 = vmatpush.bf16.msrb.mxu1 %v2183_v2  ;;  %719 = vmatpush.bf16.msrb.mxu2 %v2059_v3  ;;  %v2848_v2 = vld [vmem:[%s4255_s3 + $0x164] sm:$0xf0]  ;;  %v2582_v3 = vld [vmem:[%s4255_s3 + $0x2d0] sm:$0xf]  ;;  %v2845_v6 = vld [vmem:[%s4255_s3 + $0x154] sm:$0xf]  ;;  %v2107_v12 = vor.u32 %v2772_v63, %v2104_v0 }
  0x38   : > { %732 = vmatpush.bf16.msrb.mxu3 %v2187_v7  ;;  %v2896_v5 = vld [vmem:[%s4255_s3 + $0x2e4] sm:$0xf0]  ;;  %v2392_v7 = vld [vmem:[%s4255_s3 + $0x168] sm:$0xf0]  ;;  %v2893_v10 = vld [vmem:[%s4255_s3 + $0x2d4] sm:$0xf]  ;;  %v2391_v13 = vor.u32 %v2848_v2, %v2390_v1 }
  0x39   : > { %v2584_v11 = vld [vmem:[%s4255_s3 + $0x2e8] sm:$0xf0]  ;;  %v2583_v14 = vor.u32 %v2896_v5, %v2582_v3  ;;  %v2558_v20 = vld [vmem:[%s4255_s3 + $0x2a0] sm:$0xf]  ;;  %v2890_v22 = vld [vmem:[%s4255_s3 + $0x2b4] sm:$0xf0] }
  0x3a   : > { %694 = vmatpush.bf16.msrb.mxu0 %v2039_v15  ;;  %v2395_v15 = vor.u32 %v2845_v6, %v2392_v7  ;;  %v2587_v21 = vor.u32 %v2893_v10, %v2584_v11  ;;  %v2368_v24 = vld [vmem:[%s4255_s3 + $0x138] sm:$0xf0]  ;;  %v2887_v25 = vld [vmem:[%s4255_s3 + $0x2a4] sm:$0xf]  ;;  %v2559_v28 = vor.u32 %v2890_v22, %v2558_v20  ;;  %v2534_v32 = vld [vmem:[%s4255_s3 + $0x270] sm:$0xf] }
  0x3b   : > { %707 = vmatpush.bf16.msrb.mxu1 %v2167_v18  ;;  %720 = vmatpush.bf16.msrb.mxu2 %v2043_v19  ;;  %v2366_v18 = vld [vmem:[%s4255_s3 + $0x120] sm:$0xf]  ;;  %v2842_v19 = vld [vmem:[%s4255_s3 + $0x134] sm:$0xf0]  ;;  %v2560_v26 = vld [vmem:[%s4255_s3 + $0x2b8] sm:$0xf0] }
  0x3c   : > { %733 = vmatpush.bf16.msrb.mxu3 %v2171_v23  ;;  %v2839_v23 = vld [vmem:[%s4255_s3 + $0x124] sm:$0xf]  ;;  %v2367_v27 = vor.u32 %v2842_v19, %v2366_v18  ;;  %v2563_v33 = vor.u32 %v2887_v25, %v2560_v26  ;;  %v2884_v34 = vld [vmem:[%s4255_s3 + $0x284] sm:$0xf0]  ;;  %v2344_v36 = vld [vmem:[%s4255_s3 + $0x108] sm:$0xf0] }
  0x3d   : > { %v2881_v37 = vld [vmem:[%s4255_s3 + $0x274] sm:$0xf]  ;;  %v2536_v38 = vld [vmem:[%s4255_s3 + $0x288] sm:$0xf0]  ;;  %v2535_v40 = vor.u32 %v2884_v34, %v2534_v32  ;;  %v2827_v45 = vld [vmem:[%s4255_s3 + $0xc4] sm:$0xf] }
  0x3e   : > { %695 = vmatpush.bf16.msrb.mxu0 %v2023_v29  ;;  %v2371_v29 = vor.u32 %v2839_v23, %v2368_v24  ;;  %v2539_v44 = vor.u32 %v2881_v37, %v2536_v38  ;;  %v2320_v46 = vld [vmem:[%s4255_s3 + $0xd8] sm:$0xf0]  ;;  %v2294_v52 = vld [vmem:[%s4255_s3 + $0x90] sm:$0xf]  ;;  %v2296_v58 = vld [vmem:[%s4255_s3 + $0xa8] sm:$0xf0] }
  0x3f   : > { %708 = vmatpush.bf16.msrb.mxu1 %v2151_v30  ;;  %721 = vmatpush.bf16.msrb.mxu2 %v2027_v31  ;;  %v2342_v30 = vld [vmem:[%s4255_s3 + $0xf0] sm:$0xf]  ;;  %v2836_v31 = vld [vmem:[%s4255_s3 + $0x104] sm:$0xf0]  ;;  %v2512_v48 = vld [vmem:[%s4255_s3 + $0x258] sm:$0xf0]  ;;  %v2323_v51 = vor.u32 %v2827_v45, %v2320_v46 }
  0x40   : > { %734 = vmatpush.bf16.msrb.mxu3 %v2155_v35  ;;  %v2833_v35 = vld [vmem:[%s4255_s3 + $0xf4] sm:$0xf]  ;;  %v2343_v39 = vor.u32 %v2836_v31, %v2342_v30  ;;  %v2486_v54 = vld [vmem:[%s4255_s3 + $0x210] sm:$0xf]  ;;  %v2488_v60 = vld [vmem:[%s4255_s3 + $0x228] sm:$0xf0] }
  0x41   : > { %v2869_v59 = vld [vmem:[%s4255_s3 + $0x214] sm:$0xf]  ;;  %v2270_v0 = vld [vmem:[%s4255_s3 + $0x60] sm:$0xf]  ;;  %v2818_v1 = vld [vmem:[%s4255_s3 + $0x74] sm:$0xf0] }
  0x42   : > { %696 = vmatpush.bf16.msrb.mxu0 %v2007_v41  ;;  %v2347_v41 = vor.u32 %v2833_v35, %v2344_v36  ;;  %v2462_v2 = vld [vmem:[%s4255_s3 + $0x1e0] sm:$0xf]  ;;  %v2491_v3 = vor.u32 %v2869_v59, %v2488_v60  ;;  %v2815_v5 = vld [vmem:[%s4255_s3 + $0x64] sm:$0xf]  ;;  %v2272_v6 = vld [vmem:[%s4255_s3 + $0x78] sm:$0xf0] }
  0x43   : > { %709 = vmatpush.bf16.msrb.mxu1 %v2135_v42  ;;  %722 = vmatpush.bf16.msrb.mxu2 %v2011_v43  ;;  %v2830_v42 = vld [vmem:[%s4255_s3 + $0xd4] sm:$0xf0]  ;;  %v2510_v43 = vld [vmem:[%s4255_s3 + $0x240] sm:$0xf]  ;;  %v2863_v7 = vld [vmem:[%s4255_s3 + $0x1e4] sm:$0xf]  ;;  %v2275_v11 = vor.u32 %v2815_v5, %v2272_v6 }
  0x44   : > { %735 = vmatpush.bf16.msrb.mxu3 %v2139_v47  ;;  %v2875_v47 = vld [vmem:[%s4255_s3 + $0x244] sm:$0xf]  ;;  %v2860_v18 = vld [vmem:[%s4255_s3 + $0x1c4] sm:$0xf0]  ;;  %v2809_v19 = vld [vmem:[%s4255_s3 + $0x34] sm:$0xf] }
  0x45   : > { %v2515_v55 = vor.u32 %v2875_v47, %v2512_v48  ;;  %v2248_v20 = vld [vmem:[%s4255_s3 + $0x48] sm:$0xf0]  ;;  %v247_v23 = vld [vmem:[%s239_s16] sm:$0xff]  ;;  %v2806_v26 = vld [vmem:[%s4255_s3 + $0x14] sm:$0xf0] }
  0x46   : > { %697 = vmatpush.bf16.msrb.mxu0 %v1991_v53  ;;  %v2824_v53 = vld [vmem:[%s4255_s3 + $0xa4] sm:$0xf0]  ;;  %v2440_v22 = vld [vmem:[%s4255_s3 + $0x1c8] sm:$0xf0]  ;;  %v2222_v25 = vld [vmem:[%s4255_s3] sm:$0xf] }
  0x47   : > { %710 = vmatpush.bf16.msrb.mxu1 %v2119_v56  ;;  %723 = vmatpush.bf16.msrb.mxu2 %v1995_v57  ;;  %v2872_v56 = vld [vmem:[%s4255_s3 + $0x224] sm:$0xf0]  ;;  %v2821_v57 = vld [vmem:[%s4255_s3 + $0x94] sm:$0xf]  ;;  %v2854_v30 = vld [vmem:[%s4255_s3 + $0x194] sm:$0xf0] }
  0x48   : > { %736 = vmatpush.bf16.msrb.mxu3 %v2123_v61  ;;  %v2295_v61 = vor.u32 %v2824_v53, %v2294_v52  ;;  %v2487_v62 = vor.u32 %v2872_v56, %v2486_v54  ;;  %v2299_v63 = vor.u32 %v2821_v57, %v2296_v58  ;;  %v2803_v31 = vld [vmem:[%s4255_s3 + $0x4] sm:$0xf]  ;;  %v2416_v35 = vld [vmem:[%s4255_s3 + $0x198] sm:$0xf0]  ;;  %v2398_v36 = vld [vmem:[%s4255_s3 + $0x158] sm:$0xf] }
  0x49   : > { %v2851_v34 = vld [vmem:[%s4255_s3 + $0x184] sm:$0xf]  ;;  %v2849_v37 = vld [vmem:[%s4255_s3 + $0x16c] sm:$0xf0]  ;;  %v2590_v38 = vld [vmem:[%s4255_s3 + $0x2d8] sm:$0xf] }
  0x4a   : > { %698 = vmatpush.bf16.msrb.mxu0 %v1975_v4  ;;  %v2866_v4 = vld [vmem:[%s4255_s3 + $0x1f4] sm:$0xf0]  ;;  %v2894_v45 = vld [vmem:[%s4255_s3 + $0x2dc] sm:$0xf]  ;;  %v2592_v46 = vld [vmem:[%s4255_s3 + $0x2f0] sm:$0xf0]  ;;  %v2419_v47 = vor.u32 %v2851_v34, %v2416_v35  ;;  %v2399_v48 = vor.u32 %v2849_v37, %v2398_v36 }
  0x4b   : > { %711 = vmatpush.bf16.msrb.mxu1 %v2103_v8  ;;  %724 = vmatpush.bf16.msrb.mxu2 %v1979_v9  ;;  %v2464_v8 = vld [vmem:[%s4255_s3 + $0x1f8] sm:$0xf0]  ;;  %v2271_v9 = vor.u32 %v2818_v1, %v2270_v0  ;;  %v2463_v10 = vor.u32 %v2866_v4, %v2462_v2  ;;  %v2843_v52 = vld [vmem:[%s4255_s3 + $0x13c] sm:$0xf0]  ;;  %v2566_v53 = vld [vmem:[%s4255_s3 + $0x2a8] sm:$0xf] }
  0x4c   : > { %737 = vmatpush.bf16.msrb.mxu3 %v2107_v12  ;;  %v2246_v12 = vld [vmem:[%s4255_s3 + $0x30] sm:$0xf]  ;;  %v2891_v56 = vld [vmem:[%s4255_s3 + $0x2bc] sm:$0xf0]  ;;  %v2840_v57 = vld [vmem:[%s4255_s3 + $0x12c] sm:$0xf] }
  0x4d   : > { %699 = vmatmul.bf16.vlgmr.msrb.gmra.mxu0 %v3293_v16  ;;  %v2376_v58 = vld [vmem:[%s4255_s3 + $0x140] sm:$0xf0]  ;;  %v2888_v60 = vld [vmem:[%s4255_s3 + $0x2ac] sm:$0xf]  ;;  %v2350_v1 = vld [vmem:[%s4255_s3 + $0xf8] sm:$0xf] }
  0x4e   : > { %1326 = vmatpush.bf16.msra.mxu0 %v2391_v13  ;;  %725 = vmatmul.bf16.vlgmr.msrb.gmra.mxu2 %v3293_v16  ;;  %v2318_v16 = vld [vmem:[%s4255_s3 + $0xc0] sm:$0xf]  ;;  %v2812_v13 = vld [vmem:[%s4255_s3 + $0x44] sm:$0xf0]  ;;  %v2379_v0 = vor.u32 %v2840_v57, %v2376_v58  ;;  %v2837_v2 = vld [vmem:[%s4255_s3 + $0x10c] sm:$0xf0] }
  0x4f   : > { %1339 = vmatpush.bf16.msra.mxu1 %v2583_v14  ;;  %1352 = vmatpush.bf16.msra.mxu2 %v2395_v15  ;;  %v2319_v49 = vor.u32 %v2830_v42, %v2318_v16  ;;  %v2438_v14 = vld [vmem:[%s4255_s3 + $0x1b0] sm:$0xf]  ;;  %v2467_v15 = vor.u32 %v2863_v7, %v2464_v8  ;;  %v2247_v24 = vor.u32 %v2812_v13, %v2246_v12  ;;  %v2846_v16 = vld [vmem:[%s4255_s3 + $0x15c] sm:$0xf]  ;;  %v2400_v42 = vld [vmem:[%s4255_s3 + $0x170] sm:$0xf0] }
  0x50   : > { %1365 = vmatpush.bf16.msra.mxu3 %v2587_v21  ;;  %712 = vmatmul.bf16.vlgmr.msrb.gmra.mxu1 %v3295_v17  ;;  %v2857_v21 = vld [vmem:[%s4255_s3 + $0x1b4] sm:$0xf]  ;;  %v2885_v5 = vld [vmem:[%s4255_s3 + $0x28c] sm:$0xf0]  ;;  %v2834_v6 = vld [vmem:[%s4255_s3 + $0xfc] sm:$0xf] }
  0x51   : > { %738 = vmatmul.bf16.vlgmr.msrb.gmra.mxu3 %v3295_v17  ;;  %v2878_v17 = vld [vmem:[%s4255_s3 + $0x254] sm:$0xf0]  ;;  %v2443_v32 = vor.u32 %v2857_v21, %v2440_v22  ;;  %v2352_v7 = vld [vmem:[%s4255_s3 + $0x110] sm:$0xf0]  ;;  %v2882_v8 = vld [vmem:[%s4255_s3 + $0x27c] sm:$0xf] }
  0x52   : > { %1327 = vmatpush.bf16.msra.mxu0 %v2367_v27  ;;  %v2511_v50 = vor.u32 %v2878_v17, %v2510_v43  ;;  %v2439_v27 = vor.u32 %v2860_v18, %v2438_v14  ;;  %v841_v43 = vunpack.c.h.b16 %v247_v23  ;;  %v2355_v12 = vor.u32 %v2834_v6, %v2352_v7  ;;  %v2326_v13 = vld [vmem:[%s4255_s3 + $0xc8] sm:$0xf]  ;;  %v2831_v14 = vld [vmem:[%s4255_s3 + $0xdc] sm:$0xf0]  ;;  %v2328_v21 = vld [vmem:[%s4255_s3 + $0xe0] sm:$0xf0] }
  0x53   : > { %1340 = vmatpush.bf16.msra.mxu1 %v2559_v28  ;;  %1353 = vmatpush.bf16.msra.mxu2 %v2371_v29  ;;  %v2251_v28 = vor.u32 %v2809_v19, %v2248_v20  ;;  %v2414_v29 = vld [vmem:[%s4255_s3 + $0x180] sm:$0xf]  ;;  %v2828_v20 = vld [vmem:[%s4255_s3 + $0xcc] sm:$0xf]  ;;  %v2870_v34 = vld [vmem:[%s4255_s3 + $0x21c] sm:$0xf] }
  0x54   : > { %1366 = vmatpush.bf16.msra.mxu3 %v2563_v33  ;;  %v2224_v33 = vld [vmem:[%s4255_s3 + $0x18] sm:$0xf0]  ;;  %v3642_v59 = vpack.c.b16 %v841_v43, %v841_v43  ;;  %v2879_v19 = vld [vmem:[%s4255_s3 + $0x25c] sm:$0xf0]  ;;  %v2876_v22 = vld [vmem:[%s4255_s3 + $0x24c] sm:$0xf] }
  0x55   : > { %v2227_v17 = vor.u32 %v2803_v31, %v2224_v33  ;;  %v2873_v31 = vld [vmem:[%s4255_s3 + $0x22c] sm:$0xf0]  ;;  %v2304_v33 = vld [vmem:[%s4255_s3 + $0xb0] sm:$0xf0]  ;;  %v2816_v43 = vld [vmem:[%s4255_s3 + $0x6c] sm:$0xf] }
  0x56   : > { %1328 = vmatpush.bf16.msra.mxu0 %v2343_v39  ;;  %v840_v39 = vunpack.c.l.b16 %v247_v23  ;;  %v2520_v23 = vld [vmem:[%s4255_s3 + $0x260] sm:$0xf0]  ;;  %v2496_v35 = vld [vmem:[%s4255_s3 + $0x230] sm:$0xf0]  ;;  %v2858_v57 = vld [vmem:[%s4255_s3 + $0x1bc] sm:$0xf] }
  0x57   : > { %1341 = vmatpush.bf16.msra.mxu1 %v2535_v40  ;;  %1354 = vmatpush.bf16.msra.mxu2 %v2347_v41  ;;  %v2223_v40 = vor.u32 %v2806_v26, %v2222_v25  ;;  %v2897_v41 = vld [vmem:[%s4255_s3 + $0x2ec] sm:$0xf0]  ;;  %v2331_v26 = vor.u32 %v2828_v20, %v2328_v21  ;;  %v2448_v58 = vld [vmem:[%s4255_s3 + $0x1d0] sm:$0xf0]  ;;  %v2852_v6 = vld [vmem:[%s4255_s3 + $0x18c] sm:$0xf] }
  0x58   : > { %1367 = vmatpush.bf16.msra.mxu3 %v2539_v44  ;;  %v2415_v44 = vor.u32 %v2854_v30, %v2414_v29  ;;  %v3631_v54 = vpack.c.b16 %v840_v39, %v840_v39  ;;  %v2494_v29 = vld [vmem:[%s4255_s3 + $0x218] sm:$0xf]  ;;  %v2523_v30 = vor.u32 %v2876_v22, %v2520_v23  ;;  %v2278_v39 = vld [vmem:[%s4255_s3 + $0x68] sm:$0xf]  ;;  %v2424_v7 = vld [vmem:[%s4255_s3 + $0x1a0] sm:$0xf0] }
  0x59   : > { %v2495_v37 = vor.u32 %v2873_v31, %v2494_v29 }
  0x5a   : > { %1329 = vmatpush.bf16.msra.mxu0 %v2319_v49  ;;  %v2591_v49 = vor.u32 %v2897_v41, %v2590_v38  ;;  %v2470_v41 = vld [vmem:[%s4255_s3 + $0x1e8] sm:$0xf] }
  0x5b   : > { %1342 = vmatpush.bf16.msra.mxu1 %v2511_v50  ;;  %1355 = vmatpush.bf16.msra.mxu2 %v2323_v51  ;;  %v2403_v50 = vor.u32 %v2846_v16, %v2400_v42  ;;  %v2374_v51 = vld [vmem:[%s4255_s3 + $0x128] sm:$0xf]  ;;  %v2499_v16 = vor.u32 %v2870_v34, %v2496_v35  ;;  %v2867_v42 = vld [vmem:[%s4255_s3 + $0x1fc] sm:$0xf0] }
  0x5c   : > { %1368 = vmatpush.bf16.msra.mxu3 %v2515_v55  ;;  %v2595_v55 = vor.u32 %v2894_v45, %v2592_v46  ;;  %v2472_v45 = vld [vmem:[%s4255_s3 + $0x200] sm:$0xf0] }
  0x5e   : > { %1330 = vmatpush.bf16.msra.mxu0 %v2295_v61  ;;  %v2568_v61 = vld [vmem:[%s4255_s3 + $0x2c0] sm:$0xf0] }
  0x5f   : > { %1343 = vmatpush.bf16.msra.mxu1 %v2487_v62  ;;  %1356 = vmatpush.bf16.msra.mxu2 %v2299_v63  ;;  %v2375_v62 = vor.u32 %v2843_v52, %v2374_v51  ;;  %v2567_v63 = vor.u32 %v2891_v56, %v2566_v53  ;;  %v2571_v4 = vor.u32 %v2888_v60, %v2568_v61  ;;  %v2446_v51 = vld [vmem:[%s4255_s3 + $0x1b8] sm:$0xf]  ;;  %v2861_v53 = vld [vmem:[%s4255_s3 + $0x1cc] sm:$0xf0]  ;;  %v2256_v56 = vld [vmem:[%s4255_s3 + $0x50] sm:$0xf0] }
  0x60   : > { %1369 = vmatpush.bf16.msra.mxu3 %v2491_v3  ;;  %v2542_v3 = vld [vmem:[%s4255_s3 + $0x278] sm:$0xf]  ;;  %v2447_v61 = vor.u32 %v2861_v53, %v2446_v51  ;;  %v2408_v53 = vld [vmem:[%s4255_s3 + $0x178] sm:$0xf0] }
  0x61   : > { %v2898_v51 = vld [vmem:[%s4255_s3 + $0x2f4] sm:$0xf0] }
  0x62   : > { %1331 = vmatpush.bf16.msra.mxu0 %v2271_v9  ;;  %v2544_v9 = vld [vmem:[%s4255_s3 + $0x290] sm:$0xf0] }
  0x63   : > { %1344 = vmatpush.bf16.msra.mxu1 %v2463_v10  ;;  %1357 = vmatpush.bf16.msra.mxu2 %v2275_v11  ;;  %v2351_v10 = vor.u32 %v2837_v2, %v2350_v1  ;;  %v2543_v11 = vor.u32 %v2885_v5, %v2542_v3  ;;  %v2547_v18 = vor.u32 %v2882_v8, %v2544_v9  ;;  %v2422_v1 = vld [vmem:[%s4255_s3 + $0x188] sm:$0xf]  ;;  %v2855_v3 = vld [vmem:[%s4255_s3 + $0x19c] sm:$0xf0]  ;;  %v2232_v5 = vld [vmem:[%s4255_s3 + $0x20] sm:$0xf0] }
  0x64   : > { %1370 = vmatpush.bf16.msra.mxu3 %v2467_v15  ;;  %v2518_v15 = vld [vmem:[%s4255_s3 + $0x248] sm:$0xf]  ;;  %v2451_v2 = vor.u32 %v2858_v57, %v2448_v58  ;;  %v2423_v9 = vor.u32 %v2855_v3, %v2422_v1  ;;  %v2895_v57 = vld [vmem:[%s4255_s3 + $0x2e4] sm:$0xf]  ;;  %v2600_v58 = vld [vmem:[%s4255_s3 + $0x2f8] sm:$0xf0] }
  0x65   : > { %v2519_v25 = vor.u32 %v2879_v19, %v2518_v15  ;;  %v2841_v3 = vld [vmem:[%s4255_s3 + $0x134] sm:$0xf] }
  0x66   : > { %1332 = vmatpush.bf16.msra.mxu0 %v2247_v24  ;;  %v2327_v24 = vor.u32 %v2831_v14, %v2326_v13 }
  0x67   : > { %1345 = vmatpush.bf16.msra.mxu1 %v2439_v27  ;;  %1358 = vmatpush.bf16.msra.mxu2 %v2251_v28  ;;  %v2302_v27 = vld [vmem:[%s4255_s3 + $0x98] sm:$0xf]  ;;  %v2825_v28 = vld [vmem:[%s4255_s3 + $0xac] sm:$0xf0] }
  0x68   : > { %1371 = vmatpush.bf16.msra.mxu3 %v2443_v32  ;;  %v2822_v32 = vld [vmem:[%s4255_s3 + $0x9c] sm:$0xf]  ;;  %v2303_v36 = vor.u32 %v2825_v28, %v2302_v27 }
  0x69   : > { %v2307_v38 = vor.u32 %v2822_v32, %v2304_v33 }
  0x6a   : > { %1333 = vmatpush.bf16.msra.mxu0 %v2223_v40  ;;  %v2819_v40 = vld [vmem:[%s4255_s3 + $0x7c] sm:$0xf0] }
  0x6b   : > { %1346 = vmatpush.bf16.msra.mxu1 %v2415_v44  ;;  %1359 = vmatpush.bf16.msra.mxu2 %v2227_v17  ;;  %v2280_v44 = vld [vmem:[%s4255_s3 + $0x80] sm:$0xf0]  ;;  %v2864_v17 = vld [vmem:[%s4255_s3 + $0x1ec] sm:$0xf]  ;;  %v2279_v46 = vor.u32 %v2819_v40, %v2278_v39 }
  0x6c   : > { %1372 = vmatpush.bf16.msra.mxu3 %v2419_v47  ;;  %v2471_v47 = vor.u32 %v2867_v42, %v2470_v41  ;;  %v2475_v52 = vor.u32 %v2864_v17, %v2472_v45 }
  0x6d   : > { %1334 = vmatmul.bf16.vlgmr.msra.gmra.mxu0 %v3631_v54 }
  0x6e   : > { %1378 = vmatpush.bf16.msrb.mxu0 %v2399_v48  ;;  %1360 = vmatmul.bf16.vlgmr.msra.gmra.mxu2 %v3631_v54  ;;  %v2283_v48 = vor.u32 %v2816_v43, %v2280_v44 }
  0x6f   : > { %1391 = vmatpush.bf16.msrb.mxu1 %v2591_v49  ;;  %1404 = vmatpush.bf16.msrb.mxu2 %v2403_v50  ;;  %v2254_v49 = vld [vmem:[%s4255_s3 + $0x38] sm:$0xf]  ;;  %v2813_v50 = vld [vmem:[%s4255_s3 + $0x4c] sm:$0xf0] }
  0x70   : > { %1417 = vmatpush.bf16.msrb.mxu3 %v2595_v55  ;;  %1347 = vmatmul.bf16.vlgmr.msra.gmra.mxu1 %v3642_v59  ;;  %v2810_v55 = vld [vmem:[%s4255_s3 + $0x3c] sm:$0xf]  ;;  %v2255_v60 = vor.u32 %v2813_v50, %v2254_v49  ;;  %v2598_v49 = vld [vmem:[%s4255_s3 + $0x2e0] sm:$0xf] }
  0x71   : > { %1373 = vmatmul.bf16.vlgmr.msra.gmra.mxu3 %v3642_v59 }
  0x72   : > { %1379 = vmatpush.bf16.msrb.mxu0 %v2375_v62  ;;  %v2259_v62 = vor.u32 %v2810_v55, %v2256_v56  ;;  %v2599_v55 = vor.u32 %v2898_v51, %v2598_v49 }
  0x73   : > { %1392 = vmatpush.bf16.msrb.mxu1 %v2567_v63  ;;  %1405 = vmatpush.bf16.msrb.mxu2 %v2379_v0  ;;  %v2230_v63 = vld [vmem:[%s4255_s3 + $0x8] sm:$0xf]  ;;  %v2807_v0 = vld [vmem:[%s4255_s3 + $0x1c] sm:$0xf0] }
  0x74   : > { %1418 = vmatpush.bf16.msrb.mxu3 %v2571_v4  ;;  %v2804_v4 = vld [vmem:[%s4255_s3 + $0xc] sm:$0xf]  ;;  %v2231_v8 = vor.u32 %v2807_v0, %v2230_v63  ;;  %v2574_v63 = vld [vmem:[%s4255_s3 + $0x2b0] sm:$0xf]  ;;  %v2892_v0 = vld [vmem:[%s4255_s3 + $0x2c4] sm:$0xf0] }
  0x76   : > { %1380 = vmatpush.bf16.msrb.mxu0 %v2351_v10  ;;  %v2235_v10 = vor.u32 %v2804_v4, %v2232_v5  ;;  %v2384_v4 = vld [vmem:[%s4255_s3 + $0x148] sm:$0xf0]  ;;  %v2889_v5 = vld [vmem:[%s4255_s3 + $0x2b4] sm:$0xf] }
  0x77   : > { %1393 = vmatpush.bf16.msrb.mxu1 %v2543_v11  ;;  %1406 = vmatpush.bf16.msrb.mxu2 %v2355_v12  ;;  %v2427_v11 = vor.u32 %v2852_v6, %v2424_v7  ;;  %v2387_v6 = vor.u32 %v2841_v3, %v2384_v4  ;;  %v2576_v7 = vld [vmem:[%s4255_s3 + $0x2c8] sm:$0xf0]  ;;  %v2874_v4 = vld [vmem:[%s4255_s3 + $0x234] sm:$0xf0] }
  0x78   : > { %1419 = vmatpush.bf16.msrb.mxu3 %v2547_v18 }
  0x7a   : > { %1381 = vmatpush.bf16.msrb.mxu0 %v2327_v24 }
  0x7b   : > { %1394 = vmatpush.bf16.msrb.mxu1 %v2519_v25  ;;  %1407 = vmatpush.bf16.msrb.mxu2 %v2331_v26 }
  0x7c   : > { %1420 = vmatpush.bf16.msrb.mxu3 %v2523_v30 }
  0x7e   : > { %1382 = vmatpush.bf16.msrb.mxu0 %v2303_v36 }
  0x7f   : > { %1395 = vmatpush.bf16.msrb.mxu1 %v2495_v37  ;;  %1408 = vmatpush.bf16.msrb.mxu2 %v2307_v38 }
  0x80   : > { %1421 = vmatpush.bf16.msrb.mxu3 %v2499_v16 }
  0x82   : > { %1383 = vmatpush.bf16.msrb.mxu0 %v2279_v46 }
  0x83   : > { %1396 = vmatpush.bf16.msrb.mxu1 %v2471_v47  ;;  %1409 = vmatpush.bf16.msrb.mxu2 %v2283_v48  ;;  %v2406_v47 = vld [vmem:[%s4255_s3 + $0x160] sm:$0xf]  ;;  %v2850_v48 = vld [vmem:[%s4255_s3 + $0x174] sm:$0xf0] }
  0x84   : > { %1422 = vmatpush.bf16.msrb.mxu3 %v2475_v52  ;;  %v2407_v50 = vor.u32 %v2850_v48, %v2406_v47  ;;  %v2847_v52 = vld [vmem:[%s4255_s3 + $0x164] sm:$0xf] }
  0x85   : > { %v2411_v56 = vor.u32 %v2847_v52, %v2408_v53 }
  0x86   : > { %1384 = vmatpush.bf16.msrb.mxu0 %v2255_v60  ;;  %v2382_v60 = vld [vmem:[%s4255_s3 + $0x130] sm:$0xf] }
  0x87   : > { %1397 = vmatpush.bf16.msrb.mxu1 %v2447_v61  ;;  %1410 = vmatpush.bf16.msrb.mxu2 %v2259_v62  ;;  %v2603_v61 = vor.u32 %v2895_v57, %v2600_v58  ;;  %v2844_v62 = vld [vmem:[%s4255_s3 + $0x144] sm:$0xf0]  ;;  %v2823_v58 = vld [vmem:[%s4255_s3 + $0xa4] sm:$0xf] }
  0x88   : > { %1423 = vmatpush.bf16.msrb.mxu3 %v2451_v2  ;;  %v2383_v1 = vor.u32 %v2844_v62, %v2382_v60  ;;  %v2575_v2 = vor.u32 %v2892_v0, %v2574_v63  ;;  %v2312_v60 = vld [vmem:[%s4255_s3 + $0xb8] sm:$0xf0]  ;;  %v2871_v62 = vld [vmem:[%s4255_s3 + $0x224] sm:$0xf] }
  0x89   : > { %v2504_v63 = vld [vmem:[%s4255_s3 + $0x238] sm:$0xf0] }
  0x8a   : > { %1385 = vmatpush.bf16.msrb.mxu0 %v2231_v8  ;;  %v2358_v8 = vld [vmem:[%s4255_s3 + $0x100] sm:$0xf]  ;;  %v2507_v0 = vor.u32 %v2871_v62, %v2504_v63 }
  0x8b   : > { %1398 = vmatpush.bf16.msrb.mxu1 %v2423_v9  ;;  %1411 = vmatpush.bf16.msrb.mxu2 %v2235_v10  ;;  %v2838_v9 = vld [vmem:[%s4255_s3 + $0x114] sm:$0xf0]  ;;  %v2579_v10 = vor.u32 %v2889_v5, %v2576_v7  ;;  %v2817_v5 = vld [vmem:[%s4255_s3 + $0x74] sm:$0xf] }
  0x8c   : > { %1424 = vmatpush.bf16.msrb.mxu3 %v2427_v11  ;;  %v2550_v11 = vld [vmem:[%s4255_s3 + $0x280] sm:$0xf] }
  0x8d   : > { %1386 = vmatmul.bf16.vlgmr.msrb.gmra.mxu0 %v3631_v54 }
  0x8e   : > { %1399 = vmatmul.bf16.vlgmr.msrb.gmra.mxu1 %v3642_v59  ;;  %1412 = vmatmul.bf16.vlgmr.msrb.gmra.mxu2 %v3631_v54 }
  0x8f   : > { %1425 = vmatmul.bf16.vlgmr.msrb.gmra.mxu3 %v3642_v59  ;;  %1430 = vmatpush.bf16.msra.mxu0 %v2407_v50 }
  0x90   : > { %1443 = vmatpush.bf16.msra.mxu1 %v2599_v55  ;;  %1456 = vmatpush.bf16.msra.mxu2 %v2411_v56 }
  0x91   : > { %1469 = vmatpush.bf16.msra.mxu3 %v2603_v61  ;;  %v2315_v61 = vor.u32 %v2823_v58, %v2312_v60 }
  0x93   : > { %1431 = vmatpush.bf16.msra.mxu0 %v2383_v1  ;;  %v2826_v1 = vld [vmem:[%s4255_s3 + $0xb4] sm:$0xf0] }
  0x94   : > { %1444 = vmatpush.bf16.msra.mxu1 %v2575_v2  ;;  %1457 = vmatpush.bf16.msra.mxu2 %v2387_v6  ;;  %v2502_v2 = vld [vmem:[%s4255_s3 + $0x220] sm:$0xf]  ;;  %v2288_v6 = vld [vmem:[%s4255_s3 + $0x88] sm:$0xf0] }
  0x95   : > { %1470 = vmatpush.bf16.msra.mxu3 %v2579_v10  ;;  %v2503_v7 = vor.u32 %v2874_v4, %v2502_v2  ;;  %v2480_v10 = vld [vmem:[%s4255_s3 + $0x208] sm:$0xf0] }
  0xae   : > { %v648_v12 = vpop.f32.mrf.mxu0 }
  0xaf   : > { %v661_v13 = vpop.f32.mrf.mxu1 }
  0xb0   : > { %v3802_v14 = vadd.f32 %v661_v13, %v648_v12  ;;  %v2886_v12 = vld [vmem:[%s4255_s3 + $0x294] sm:$0xf0]  ;;  %v2835_v13 = vld [vmem:[%s4255_s3 + $0x104] sm:$0xf] }
  0xb2   : > { %v1482_v19 = vmul.f32 %v3802_v14, %v3802_v14 }
  0xb3   : > { %v674_v15 = vpop.f32.mrf.mxu2 }
  0xb4   : > { %v687_v18 = vpop.f32.mrf.mxu3 }
  0xb5   : > { %v3806_v20 = vadd.f32 %v687_v18, %v674_v15  ;;  %v2359_v15 = vor.u32 %v2838_v9, %v2358_v8  ;;  %v2360_v18 = vld [vmem:[%s4255_s3 + $0x118] sm:$0xf0]  ;;  %v2291_v8 = vor.u32 %v2817_v5, %v2288_v6  ;;  %v2865_v9 = vld [vmem:[%s4255_s3 + $0x1f4] sm:$0xf] }
  0xb6   : > { %v650_v21 = vpop.f32.mrf.mxu0 }
  0xb7   : > { %v1483_v22 = vmul.f32 %v3806_v20, %v3806_v20  ;;  %v663_v23 = vpop.f32.mrf.mxu1  ;;  %v2552_v21 = vld [vmem:[%s4255_s3 + $0x298] sm:$0xf0]  ;;  %1432 = vmatpush.bf16.msra.mxu0 %v2359_v15  ;;  %v2478_v15 = vld [vmem:[%s4255_s3 + $0x1f0] sm:$0xf] }
  0xb8   : > { %v2363_v23 = vor.u32 %v2835_v13, %v2360_v18  ;;  %v2820_v13 = vld [vmem:[%s4255_s3 + $0x84] sm:$0xf0] }
  0xb9   : > { %v1486_v24 = vadd.f32 %v1483_v22, %v1482_v19  ;;  %v2883_v19 = vld [vmem:[%s4255_s3 + $0x284] sm:$0xf]  ;;  %v2551_v22 = vor.u32 %v2886_v12, %v2550_v11  ;;  %v2483_v11 = vor.u32 %v2865_v9, %v2480_v10  ;;  %v2286_v12 = vld [vmem:[%s4255_s3 + $0x70] sm:$0xf] }
  0xba   : > { %1458 = vmatpush.bf16.msra.mxu2 %v2363_v23  ;;  %v2287_v18 = vor.u32 %v2820_v13, %v2286_v12 }
  0xbb   : > { %v676_v25 = vpop.f32.mrf.mxu2  ;;  %1445 = vmatpush.bf16.msra.mxu1 %v2551_v22  ;;  %v2264_v22 = vld [vmem:[%s4255_s3 + $0x58] sm:$0xf0] }
  0xbc   : > { %v689_v26 = vpop.f32.mrf.mxu3  ;;  %v2832_v25 = vld [vmem:[%s4255_s3 + $0xe4] sm:$0xf0] }
  0xbd   : > { %v2526_v26 = vld [vmem:[%s4255_s3 + $0x250] sm:$0xf] }
  0xca   : > { %v700_v27 = vpop.f32.mrf.mxu0 }
  0xcd   : > { %v713_v28 = vpop.f32.mrf.mxu1 }
  0xce   : > { %v3810_v29 = vadd.f32 %v713_v28, %v700_v27  ;;  %v2555_v28 = vor.u32 %v2883_v19, %v2552_v21  ;;  %v2868_v19 = vld [vmem:[%s4255_s3 + $0x204] sm:$0xf0]  ;;  %v2811_v21 = vld [vmem:[%s4255_s3 + $0x44] sm:$0xf] }
  0xcf   : > { %v2479_v23 = vor.u32 %v2868_v19, %v2478_v15 }
  0xd0   : > { %v1484_v30 = vmul.f32 %v3810_v29, %v3810_v29  ;;  %1471 = vmatpush.bf16.msra.mxu3 %v2555_v28  ;;  %v2262_v28 = vld [vmem:[%s4255_s3 + $0x40] sm:$0xf] }
  0xd1   : > { %v726_v31 = vpop.f32.mrf.mxu2 }
  0xd2   : > { %v1487_v33 = vadd.f32 %v1486_v24, %v1484_v30  ;;  %v702_v35 = vpop.f32.mrf.mxu0  ;;  %v2334_v24 = vld [vmem:[%s4255_s3 + $0xd0] sm:$0xf]  ;;  %v2880_v30 = vld [vmem:[%s4255_s3 + $0x264] sm:$0xf0] }
  0xd4   : > { %v739_v32 = vpop.f32.mrf.mxu3 }
  0xd5   : > { %v3814_v34 = vadd.f32 %v739_v32, %v726_v31  ;;  %v715_v37 = vpop.f32.mrf.mxu1  ;;  %v2829_v31 = vld [vmem:[%s4255_s3 + $0xd4] sm:$0xf]  ;;  %v2336_v32 = vld [vmem:[%s4255_s3 + $0xe8] sm:$0xf0] }
  0xd6   : > { %v2877_v37 = vld [vmem:[%s4255_s3 + $0x254] sm:$0xf] }
  0xd7   : > { %v1485_v36 = vmul.f32 %v3814_v34, %v3814_v34 }
  0xd9   : > { %v3818_v38 = vadd.f32 %v1487_v33, %v1485_v36  ;;  %v728_v39 = vpop.f32.mrf.mxu2 }
  0xda   : > { %v2528_v39 = vld [vmem:[%s4255_s3 + $0x268] sm:$0xf0] }
  0xdc   : > { %v741_v40 = vpop.f32.mrf.mxu3 }
  0xdd   : > { %v2335_v40 = vor.u32 %v2832_v25, %v2334_v24  ;;  %v2267_v24 = vor.u32 %v2811_v21, %v2264_v22  ;;  %v2859_v25 = vld [vmem:[%s4255_s3 + $0x1c4] sm:$0xf] }
  0xdf   : > { %1433 = vmatpush.bf16.msra.mxu0 %v2335_v40 }
  0xea   : > { %v1335_v41 = vpop.f32.mrf.mxu0 }
  0xed   : > { %v1348_v16 = vpop.f32.mrf.mxu1 }
  0xee   : > { %v3910_v33 = vadd.f32 %v1348_v16, %v1335_v41  ;;  %v2339_v41 = vor.u32 %v2829_v31, %v2336_v32  ;;  %v2531_v16 = vor.u32 %v2877_v37, %v2528_v39  ;;  %v2454_v31 = vld [vmem:[%s4255_s3 + $0x1c0] sm:$0xf]  ;;  %v2805_v37 = vld [vmem:[%s4255_s3 + $0x14] sm:$0xf]  ;;  %v2240_v39 = vld [vmem:[%s4255_s3 + $0x28] sm:$0xf0] }
  0xf0   : > { %1459 = vmatpush.bf16.msra.mxu2 %v2339_v41  ;;  %1472 = vmatpush.bf16.msra.mxu3 %v2531_v16  ;;  %v2853_v41 = vld [vmem:[%s4255_s3 + $0x194] sm:$0xf]  ;;  %v2432_v16 = vld [vmem:[%s4255_s3 + $0x1a8] sm:$0xf0] }
  0xf1   : > { %v1361_v42 = vpop.f32.mrf.mxu2 }
  0xf2   : > { %v1337_v44 = vpop.f32.mrf.mxu0 }
  0xf4   : > { %v1374_v43 = vpop.f32.mrf.mxu3  ;;  %1460 = vmatpush.bf16.msra.mxu2 %v2315_v61  ;;  %1473 = vmatpush.bf16.msra.mxu3 %v2507_v0 }
  0xf5   : > { %v1350_v17 = vpop.f32.mrf.mxu1  ;;  %v3912_v35 = vadd.f32 %v1374_v43, %v1361_v42  ;;  %v1502_v42 = vmul.f32 %v3910_v33, %v3910_v33 }
  0xf6   : > { %v2527_v17 = vor.u32 %v2880_v30, %v2526_v26  ;;  %v2456_v26 = vld [vmem:[%s4255_s3 + $0x1d8] sm:$0xf0]  ;;  %v2814_v30 = vld [vmem:[%s4255_s3 + $0x54] sm:$0xf0] }
  0xf7   : > { %v1503_v43 = vmul.f32 %v3912_v35, %v3912_v35  ;;  %v2263_v32 = vor.u32 %v2814_v30, %v2262_v28 }
  0xf8   : > { %1446 = vmatpush.bf16.msra.mxu1 %v2527_v17  ;;  %1461 = vmatpush.bf16.msra.mxu2 %v2291_v8  ;;  %v2243_v17 = vor.u32 %v2805_v37, %v2240_v39 }
  0xf9   : > { %v1363_v45 = vpop.f32.mrf.mxu2  ;;  %v1506_v51 = vadd.f32 %v1503_v43, %v1502_v42  ;;  %1474 = vmatpush.bf16.msra.mxu3 %v2483_v11  ;;  %v2435_v42 = vor.u32 %v2853_v41, %v2432_v16  ;;  %v2238_v43 = vld [vmem:[%s4255_s3 + $0x10] sm:$0xf] }
  0xfc   : > { %v1376_v46 = vpop.f32.mrf.mxu3  ;;  %1447 = vmatpush.bf16.msra.mxu1 %v2503_v7  ;;  %1462 = vmatpush.bf16.msra.mxu2 %v2267_v24 }
 0x100   : > { %1448 = vmatpush.bf16.msra.mxu1 %v2479_v23  ;;  %1463 = vmatpush.bf16.msra.mxu2 %v2243_v17 }
 0x103   : > { %1464 = vmatmul.bf16.vlgmr.msra.gmra.mxu2 %v3631_v54 }
 0x10a   : > { %v1387_v27 = vpop.f32.mrf.mxu0 }
 0x10b   : > { %v1400_v36 = vpop.f32.mrf.mxu1 }
 0x10c   : > { %v3920_v44 = vadd.f32 %v1400_v36, %v1387_v27  ;;  %v2459_v27 = vor.u32 %v2859_v25, %v2456_v26  ;;  %v2862_v36 = vld [vmem:[%s4255_s3 + $0x1d4] sm:$0xf0] }
 0x10d   : > { %v2455_v40 = vor.u32 %v2862_v36, %v2454_v31 }
 0x10e   : > { %v1504_v45 = vmul.f32 %v3920_v44, %v3920_v44  ;;  %1475 = vmatpush.bf16.msra.mxu3 %v2459_v27 }
 0x10f   : > { %1449 = vmatpush.bf16.msra.mxu1 %v2455_v40 }
 0x110   : > { %v1507_v53 = vadd.f32 %v1506_v51, %v1504_v45  ;;  %v2808_v45 = vld [vmem:[%s4255_s3 + $0x24] sm:$0xf0] }
 0x111   : > { %v1413_v46 = vpop.f32.mrf.mxu2 }
 0x112   : > { %v1426_v47 = vpop.f32.mrf.mxu3  ;;  %v1389_v48 = vpop.f32.mrf.mxu0  ;;  %1476 = vmatpush.bf16.msra.mxu3 %v2435_v42 }
 0x113   : > { %v3928_v49 = vadd.f32 %v1426_v47, %v1413_v46  ;;  %v1402_v50 = vpop.f32.mrf.mxu1  ;;  %v2430_v46 = vld [vmem:[%s4255_s3 + $0x190] sm:$0xf]  ;;  %v2239_v47 = vor.u32 %v2808_v45, %v2238_v43  ;;  %v2856_v48 = vld [vmem:[%s4255_s3 + $0x1a4] sm:$0xf0] }
 0x114   : > { %v2431_v50 = vor.u32 %v2856_v48, %v2430_v46  ;;  %v2664_v48 = vld [vmem:[%s4256_s4 + $0x70] sm:$0xf] }
 0x115   : > { %v1505_v52 = vmul.f32 %v3928_v49, %v3928_v49  ;;  %1477 = vmatmul.bf16.vlgmr.msra.gmra.mxu3 %v3642_v59 }
 0x116   : > { %1450 = vmatpush.bf16.msra.mxu1 %v2431_v50  ;;  %v2914_v50 = vld [vmem:[%s4256_s4 + $0x74] sm:$0xf0] }
 0x117   : > { %v1508_v55 = vadd.f32 %v1507_v53, %v1505_v52 }
 0x119   : > { %1509 = vadd.xlane.f32.xlu0 %v1508_v55  ;;  %v1415_v56 = vpop.f32.mrf.mxu2  ;;  %1451 = vmatmul.bf16.vlgmr.msra.gmra.mxu1 %v3642_v59 }
 0x11a   : > { %v1428_v57 = vpop.f32.mrf.mxu3 }
 0x121   : > { %1489 = vadd.xlane.f32.xlu0 %v3818_v38  ;;  %v2310_v38 = vld [vmem:[%s4255_s3 + $0xa0] sm:$0xf] }
 0x122   : > { %v2311_v3 = vor.u32 %v2826_v1, %v2310_v38 }
 0x124   : > { %1434 = vmatpush.bf16.msra.mxu0 %v2311_v3  ;;  %v1522_v3 = vpack.c.bf16 %v3802_v14, %v3802_v14 }
 0x128   : > { %1435 = vmatpush.bf16.msra.mxu0 %v2287_v18 }
 0x12c   : > { %1436 = vmatpush.bf16.msra.mxu0 %v2263_v32 }
 0x130   : > { %1437 = vmatpush.bf16.msra.mxu0 %v2239_v47 }
 0x133   : > { %1438 = vmatmul.bf16.vlgmr.msra.gmra.mxu0 %v3631_v54 }
 0x186   : > { %v1465_v6 = vpop.f32.mrf.mxu2 }
 0x18c   : > { %v1510_v51 = vpop.xlane.xlu0 %1509 }
 0x18d   : > { %v1511_v52 = vmax.f32 %v1510_v51, 1e-24  ;;  %v2728_v51 = vld [vmem:[%s4256_s4 + $0xf0] sm:$0xf] }
 0x18f   : > { %2939 = vrsqrt.f32 %v1511_v52  ;;  %vm1518_vm1 = vweird.f32 %v1511_v52 }
 0x194   : > { %v1490_v13 = vpop.xlane.xlu0 %1489 }
 0x195   : > { %v2940_v53 = vpop.eup %2939  ;;  %v1491_v15 = vmax.f32 %v1490_v13, 1e-24  ;;  %v2704_v13 = vld [vmem:[%s4256_s4 + $0xc0] sm:$0xf] }
 0x196   : > { %v1513_v55 = vmul.f32 %v2940_v53, %v1511_v52  ;;  %vm1519_vm0 = vweird.f32 %v2940_v53  ;;  %v1452_v4 = vpop.f32.mrf.mxu1  ;;  %v2665_v52 = vor.u32 %v2914_v50, %v2664_v48  ;;  %v2920_v48 = vld [vmem:[%s4256_s4 + $0xa4] sm:$0xf0]  ;;  %v2903_v50 = vld [vmem:[%s4256_s4 + $0x24] sm:$0xf] }
 0x197   : > { %vm1520_vm2 = vmor %vm1518_vm1, %vm1519_vm0  ;;  %2941 = vrsqrt.f32 %v1491_v15  ;;  %vm1498_vm5 = vweird.f32 %v1491_v15 }
 0x198   : > { %v1514_v56 = vmul.f32 %v2940_v53, %v1513_v55  ;;  %v1478_v14 = vpop.f32.mrf.mxu3  ;;  %v2913_v55 = vld [vmem:[%s4256_s4 + $0x74] sm:$0xf] }
 0x199   : > { %v1479_v8 = vadd.f32 %v1478_v14, %v1465_v6  ;;  %v2712_v6 = vld [vmem:[%s4256_s4 + $0xd0] sm:$0xf]  ;;  %v2909_v14 = vld [vmem:[%s4256_s4 + $0x54] sm:$0xf] }
 0x19a   : > { %v1515_v57 = vmul.f32 0.5, %v1514_v56  ;;  %v2666_v56 = vld [vmem:[%s4256_s4 + $0x78] sm:$0xf0] }
 0x19c   : > { %v1516_v58 = vsub.f32 1.5, %v1515_v57 }
 0x19d   : > { %v2942_v18 = vpop.eup %2941 }
 0x19e   : > { %v1517_v60 = vmul.f32 %v2940_v53, %v1516_v58  ;;  %v1454_v11 = vpop.f32.mrf.mxu1  ;;  %v1493_v19 = vmul.f32 %v2942_v18, %v1491_v15  ;;  %vm1499_vm4 = vweird.f32 %v2942_v18  ;;  %v2669_v58 = vor.u32 %v2913_v55, %v2666_v56 }
 0x19f   : > { %vm1500_vm6 = vmor %vm1498_vm5, %vm1499_vm4 }
 0x1a0   : > { %v1521_v61 = vsel %vm1520_vm2, %v2940_v53, %v1517_v60  ;;  %v1480_v12 = vpop.f32.mrf.mxu3  ;;  %v1494_v21 = vmul.f32 %v2942_v18, %v1493_v19  ;;  %v2930_v53 = vld [vmem:[%s4256_s4 + $0xf4] sm:$0xf0]  ;;  %v2929_v60 = vld [vmem:[%s4256_s4 + $0xf4] sm:$0xf]  ;;  %v2907_v19 = vld [vmem:[%s4256_s4 + $0x44] sm:$0xf] }
 0x1a1   : > { %v1526_v62 = vmul.f32 %v1521_v61, %v3910_v33  ;;  %v1527_v63 = vmul.f32 %v1521_v61, %v3912_v35  ;;  %v1528_v54 = vmul.f32 %v1521_v61, %v3920_v44  ;;  %v1529_v59 = vmul.f32 %v1521_v61, %v3928_v49  ;;  %v2730_v61 = vld [vmem:[%s4256_s4 + $0xf8] sm:$0xf0]  ;;  %v2908_v12 = vld [vmem:[%s4256_s4 + $0x44] sm:$0xf0] }
 0x1a2   : > { %v1523_v33 = vpack.c.bf16 %v3806_v20, %v3806_v20  ;;  %v1524_v35 = vpack.c.bf16 %v3810_v29, %v3810_v29  ;;  %v1525_v44 = vpack.c.bf16 %v3814_v34, %v3814_v34  ;;  %v1601_v20 = vpack.c.bf16 %v1479_v8, %v1479_v8  ;;  %v1467_v34 = vpop.f32.mrf.mxu2 }
 0x1a3   : > { %v1530_v0 = vpack.c.bf16 %v1526_v62, %v1526_v62  ;;  %v1531_v38 = vpack.c.bf16 %v1527_v63, %v1527_v63  ;;  %v1532_v1 = vpack.c.bf16 %v1528_v54, %v1528_v54  ;;  %v1533_v2 = vpack.c.bf16 %v1529_v59, %v1529_v59  ;;  %v2656_v62 = vld [vmem:[%s4256_s4 + $0x60] sm:$0xf]  ;;  %v2912_v54 = vld [vmem:[%s4256_s4 + $0x64] sm:$0xf0] }
 0x1a4   : > { %v1610_v29 = vsel %vm1605_vm3, %v1601_v20, 0  ;;  %v1495_v22 = vmul.f32 0.5, %v1494_v21  ;;  %v2729_v57 = vor.u32 %v2930_v53, %v2728_v51  ;;  %v2733_v63 = vor.u32 %v2929_v60, %v2730_v61  ;;  %v2720_v59 = vld [vmem:[%s4256_s4 + $0xe0] sm:$0xf]  ;;  %v2925_v20 = vld [vmem:[%s4256_s4 + $0xd4] sm:$0xf] }
 0x1a5   : > { %1541 = vmatpush.bf16.xpose.msrb.mxu0 %v1530_v0  ;;  %1554 = vmatpush.bf16.xpose.msrb.mxu1 %v1531_v38  ;;  %v2928_v0 = vld [vmem:[%s4256_s4 + $0xe4] sm:$0xf0]  ;;  %v2657_v38 = vor.u32 %v2912_v54, %v2656_v62  ;;  %v2640_v34 = vld [vmem:[%s4256_s4 + $0x40] sm:$0xf]  ;;  %v2642_v21 = vld [vmem:[%s4256_s4 + $0x48] sm:$0xf0] }
 0x1a6   : > { %1567 = vmatpush.bf16.xpose.msrb.mxu2 %v1532_v1  ;;  %1580 = vmatpush.bf16.xpose.msrb.mxu3 %v1533_v2  ;;  %v1496_v25 = vsub.f32 1.5, %v1495_v22  ;;  %v2721_v1 = vor.u32 %v2928_v0, %v2720_v59  ;;  %v2911_v2 = vld [vmem:[%s4256_s4 + $0x64] sm:$0xf]  ;;  %v2626_v51 = vld [vmem:[%s4256_s4 + $0x28] sm:$0xf0] }
 0x1a7   : > { %v2923_v22 = vld [vmem:[%s4256_s4 + $0xc4] sm:$0xf]  ;;  %v2690_v53 = vld [vmem:[%s4256_s4 + $0xa8] sm:$0xf0]  ;;  %v2616_v60 = vld [vmem:[%s4256_s4 + $0x10] sm:$0xf] }
 0x1a8   : > { %v1497_v30 = vmul.f32 %v2942_v18, %v1496_v25  ;;  %v2902_v61 = vld [vmem:[%s4256_s4 + $0x14] sm:$0xf0]  ;;  %v2680_v62 = vld [vmem:[%s4256_s4 + $0x90] sm:$0xf]  ;;  %v2901_v59 = vld [vmem:[%s4256_s4 + $0x14] sm:$0xf] }
 0x1a9   : > { %v2918_v54 = vld [vmem:[%s4256_s4 + $0x94] sm:$0xf0]  ;;  %v2618_v0 = vld [vmem:[%s4256_s4 + $0x18] sm:$0xf0] }
 0x1aa   : > { %v1501_v39 = vsel %vm1500_vm6, %v2942_v18, %v1497_v30  ;;  %v2924_v18 = vld [vmem:[%s4256_s4 + $0xc4] sm:$0xf0]  ;;  %v2696_v30 = vld [vmem:[%s4256_s4 + $0xb0] sm:$0xf] }
 0x1ab   : > { %v2705_v25 = vor.u32 %v2924_v18, %v2704_v13 }
 0x1ac   : > { %1542 = vmatmul.bf16.vlgmr.msrb.gmra.mxu0 %v1522_v3  ;;  %1555 = vmatmul.bf16.vlgmr.msrb.gmra.mxu1 %v1523_v33  ;;  %v2658_v3 = vld [vmem:[%s4256_s4 + $0x68] sm:$0xf0]  ;;  %v2927_v33 = vld [vmem:[%s4256_s4 + $0xe4] sm:$0xf] }
 0x1ad   : > { %1568 = vmatmul.bf16.vlgmr.msrb.gmra.mxu2 %v1524_v35  ;;  %1581 = vmatmul.bf16.vlgmr.msrb.gmra.mxu3 %v1525_v44  ;;  %v2661_v35 = vor.u32 %v2911_v2, %v2658_v3  ;;  %v2722_v44 = vld [vmem:[%s4256_s4 + $0xe8] sm:$0xf0]  ;;  %v2617_v2 = vor.u32 %v2902_v61, %v2616_v60  ;;  %v2681_v3 = vor.u32 %v2918_v54, %v2680_v62 }
 0x1ae   : > { %1632 = vmatpush.bf16.msra.mxu1 %v1610_v29  ;;  %1832 = vmatpush.bf16.msra.mxu2 %v2665_v52  ;;  %v2919_v52 = vld [vmem:[%s4256_s4 + $0xa4] sm:$0xf] }
 0x1af   : > { %1845 = vmatpush.bf16.msra.mxu3 %v2729_v57 }
 0x1b0   : > { %v1439_v49 = vpop.f32.mrf.mxu0 }
 0x1b1   : > { %v1453_v5 = vadd.f32 %v1452_v4, %v1439_v49  ;;  %v2648_v49 = vld [vmem:[%s4256_s4 + $0x50] sm:$0xf]  ;;  %v2910_v4 = vld [vmem:[%s4256_s4 + $0x54] sm:$0xf0] }
 0x1b2   : > { %1871 = vmatpush.bf16.msrb.mxu1 %v2733_v63  ;;  %1833 = vmatpush.bf16.msra.mxu2 %v2657_v38  ;;  %v2649_v8 = vor.u32 %v2910_v4, %v2648_v49  ;;  %v2693_v63 = vor.u32 %v2919_v52, %v2690_v53  ;;  %v2917_v38 = vld [vmem:[%s4256_s4 + $0x94] sm:$0xf] }
 0x1b3   : > { %v1600_v7 = vpack.c.bf16 %v1453_v5, %v1453_v5  ;;  %v2725_v5 = vor.u32 %v2927_v33, %v2722_v44  ;;  %1846 = vmatpush.bf16.msra.mxu3 %v2721_v1  ;;  %v2682_v1 = vld [vmem:[%s4256_s4 + $0x98] sm:$0xf0]  ;;  %v2621_v33 = vor.u32 %v2901_v59, %v2618_v0 }
 0x1b5   : > { %v1607_v9 = vsel %vm1605_vm3, %v1600_v7, 0  ;;  %v2926_v7 = vld [vmem:[%s4256_s4 + $0xd4] sm:$0xf0] }
 0x1b6   : > { %1619 = vmatpush.bf16.msra.mxu0 %v1607_v9  ;;  %v2650_v9 = vld [vmem:[%s4256_s4 + $0x58] sm:$0xf0]  ;;  %v2713_v29 = vor.u32 %v2926_v7, %v2712_v6  ;;  %1872 = vmatpush.bf16.msrb.mxu1 %v2725_v5  ;;  %v2608_v5 = vld [vmem:[%s4256_s4] sm:$0xf]  ;;  %v2900_v6 = vld [vmem:[%s4256_s4 + $0x4] sm:$0xf0] }
 0x1b7   : > { %v2653_v11 = vor.u32 %v2909_v14, %v2650_v9  ;;  %1834 = vmatpush.bf16.msra.mxu2 %v2649_v8  ;;  %v2609_v7 = vor.u32 %v2900_v6, %v2608_v5  ;;  %v2916_v14 = vld [vmem:[%s4256_s4 + $0x84] sm:$0xf0]  ;;  %v2899_v8 = vld [vmem:[%s4256_s4 + $0x4] sm:$0xf]  ;;  %v2610_v9 = vld [vmem:[%s4256_s4 + $0x8] sm:$0xf0] }
 0x1b8   : > { %v1441_v10 = vpop.f32.mrf.mxu0  ;;  %1847 = vmatpush.bf16.msra.mxu3 %v2713_v29  ;;  %v2915_v29 = vld [vmem:[%s4256_s4 + $0x84] sm:$0xf] }
 0x1b9   : > { %v2714_v10 = vld [vmem:[%s4256_s4 + $0xd8] sm:$0xf0] }
 0x1ba   : > { %1858 = vmatpush.bf16.msrb.mxu0 %v2669_v58  ;;  %v2717_v15 = vor.u32 %v2925_v20, %v2714_v10  ;;  %v2629_v58 = vor.u32 %v2903_v50, %v2626_v51  ;;  %v2613_v10 = vor.u32 %v2899_v8, %v2610_v9 }
 0x1bc   : > { %1873 = vmatpush.bf16.msrb.mxu1 %v2717_v15  ;;  %1848 = vmatpush.bf16.msra.mxu3 %v2705_v25 }
 0x1be   : > { %1859 = vmatpush.bf16.msrb.mxu0 %v2661_v35  ;;  %v2685_v35 = vor.u32 %v2917_v38, %v2682_v1 }
 0x1c2   : > { %1860 = vmatpush.bf16.msrb.mxu0 %v2653_v11  ;;  %v2674_v11 = vld [vmem:[%s4256_s4 + $0x88] sm:$0xf0] }
 0x229   : > { %v1543_v23 = vpop.f32.mrf.mxu0  ;;  %v1556_v24 = vpop.f32.mrf.mxu1 }
 0x22a   : > { %v1557_v26 = vadd.f32 %v1556_v24, %v1543_v23  ;;  %v2706_v23 = vld [vmem:[%s4256_s4 + $0xc8] sm:$0xf0]  ;;  %v2641_v24 = vor.u32 %v2908_v12, %v2640_v34  ;;  %v2677_v34 = vor.u32 %v2915_v29, %v2674_v11 }
 0x22c   : > { %1835 = vmatpush.bf16.msra.mxu2 %v2641_v24 }
 0x230   : > { %v1569_v27 = vpop.f32.mrf.mxu2  ;;  %v1582_v28 = vpop.f32.mrf.mxu3 }
 0x231   : > { %v1570_v31 = vadd.f32 %v1569_v27, %v1557_v26  ;;  %v1545_v32 = vpop.f32.mrf.mxu0  ;;  %v1558_v36 = vpop.f32.mrf.mxu1  ;;  %v2645_v26 = vor.u32 %v2907_v19, %v2642_v21  ;;  %v2632_v27 = vld [vmem:[%s4256_s4 + $0x30] sm:$0xf] }
 0x232   : > { %v2922_v32 = vld [vmem:[%s4256_s4 + $0xb4] sm:$0xf0]  ;;  %v2905_v36 = vld [vmem:[%s4256_s4 + $0x34] sm:$0xf] }
 0x233   : > { %v1583_v37 = vadd.f32 %v1582_v28, %v1570_v31  ;;  %v2906_v28 = vld [vmem:[%s4256_s4 + $0x34] sm:$0xf0]  ;;  %v2709_v31 = vor.u32 %v2923_v22, %v2706_v23  ;;  %1861 = vmatpush.bf16.msrb.mxu0 %v2645_v26 }
 0x235   : > { %v1586_v40 = vmul.f32 %v1583_v37, %v1501_v39  ;;  %v2634_v37 = vld [vmem:[%s4256_s4 + $0x38] sm:$0xf0]  ;;  %v2921_v39 = vld [vmem:[%s4256_s4 + $0xb4] sm:$0xf]  ;;  %1874 = vmatpush.bf16.msrb.mxu1 %v2709_v31 }
 0x237   : > { %v1588_v17 = vsel %vm1587_vm7, %v1586_v40, -inf }
 0x238   : > { %v1571_v41 = vpop.f32.mrf.mxu2  ;;  %v1584_v16 = vpop.f32.mrf.mxu3  ;;  %1589 = vmax.xlane.f32.xlu1 %v1588_v17  ;;  %v2633_v17 = vor.u32 %v2906_v28, %v2632_v27 }
 0x239   : > { %v2697_v41 = vor.u32 %v2922_v32, %v2696_v30  ;;  %v2637_v16 = vor.u32 %v2905_v36, %v2634_v37 }
 0x23a   : > { %1836 = vmatpush.bf16.msra.mxu2 %v2633_v17 }
 0x23b   : > { %1849 = vmatpush.bf16.msra.mxu3 %v2697_v41  ;;  %1862 = vmatpush.bf16.msrb.mxu0 %v2637_v16 }
 0x23f   : > { %1863 = vmatpush.bf16.msrb.mxu0 %v2629_v58 }
 0x243   : > { %1864 = vmatpush.bf16.msrb.mxu0 %v2621_v33 }
 0x247   : > { %1865 = vmatpush.bf16.msrb.mxu0 %v2613_v10 }
 0x2ab   : > { %v1590_v42 = vpop.xlane.xlu1 %1589 }
 0x2ac   : > { %v1591_v43 = vsub.f32 %v1586_v40, %v1590_v42  ;;  %v2698_v40 = vld [vmem:[%s4256_s4 + $0xb8] sm:$0xf0]  ;;  %v2624_v42 = vld [vmem:[%s4256_s4 + $0x20] sm:$0xf] }
 0x2ae   : > { %v1592_v45 = vmul.f32 1.442695, %v1591_v43  ;;  %v2904_v43 = vld [vmem:[%s4256_s4 + $0x24] sm:$0xf0] }
 0x2af   : > { %v2625_v55 = vor.u32 %v2904_v43, %v2624_v42 }
 0x2b0   : > { %2943 = vpow2.f32 %v1592_v45  ;;  %v2688_v45 = vld [vmem:[%s4256_s4 + $0xa0] sm:$0xf] }
 0x2b1   : > { %v2689_v57 = vor.u32 %v2920_v48, %v2688_v45  ;;  %1837 = vmatpush.bf16.msra.mxu2 %v2625_v55 }
 0x2b3   : > { %1850 = vmatpush.bf16.msra.mxu3 %v2689_v57 }
 0x2b5   : > { %1838 = vmatpush.bf16.msra.mxu2 %v2617_v2 }
 0x2b6   : > { %v4046_v46 = vpop.eup %2943 }
 0x2b7   : > { %v1594_v47 = vsel %vm1587_vm7, %v4046_v46, 0.0  ;;  %1851 = vmatpush.bf16.msra.mxu3 %v2681_v3 }
 0x2b8   : > { %1595 = vadd.xlane.f32.xlu1 %v1594_v47  ;;  %v2701_v47 = vor.u32 %v2921_v39, %v2698_v40 }
 0x2b9   : > { %1839 = vmatpush.bf16.msra.mxu2 %v2609_v7 }
 0x2ba   : > { %1875 = vmatpush.bf16.msrb.mxu1 %v2701_v47 }
 0x2be   : > { %1876 = vmatpush.bf16.msrb.mxu1 %v2693_v63 }
 0x2c2   : > { %1877 = vmatpush.bf16.msrb.mxu1 %v2685_v35 }
 0x2c6   : > { %1878 = vmatpush.bf16.msrb.mxu1 %v2677_v34 }
 0x32b   : > { %v1596_v56 = vpop.xlane.xlu1 %1595 }
 0x32c   : > { %2945 = vrcp.f32 %v1596_v56 }
 0x332   : > { %v2946_v44 = vpop.eup %2945 }
 0x333   : > { %v1598_v49 = vmul.f32 %v2946_v44, %v4046_v46  ;;  %v2672_v46 = vld [vmem:[%s4256_s4 + $0x80] sm:$0xf] }
 0x334   : > { %v2673_v20 = vor.u32 %v2916_v14, %v2672_v46 }
 0x335   : > { %v1599_v4 = vpack.c.bf16 %v1598_v49, %v1598_v49 }
 0x336   : > { %1852 = vmatpush.bf16.msra.mxu3 %v2673_v20 }
 0x337   : > { %2604 = vmatmul.msk.bf16.vlgmr.msra.gmra.mxu0 %vm1587_vm7, %v1599_v4  ;;  %2605 = vmatmul.msk.bf16.vlgmr.msra.gmra.mxu1 %vm1587_vm7, %v1599_v4 }
 0x3b4   : > { %v1621_v12 = vpop.f32.mrf.mxu0  ;;  %v1634_v13 = vpop.f32.mrf.mxu1 }
 0x3b5   : > { %v1638_v15 = vpack.c.bf16 %v1621_v12, %v1621_v12  ;;  %v1639_v18 = vpack.c.bf16 %v1634_v13, %v1634_v13 }
 0x3b7   : > { %1840 = vmatmul.bf16.vlgmr.msra.gmra.mxu2 %v1638_v15  ;;  %1853 = vmatmul.bf16.vlgmr.msra.gmra.mxu3 %v1639_v18 }
 0x3b8   : > { %1866 = vmatmul.bf16.vlgmr.msrb.gmra.mxu0 %v1638_v15  ;;  %1879 = vmatmul.bf16.vlgmr.msrb.gmra.mxu1 %v1639_v18 }
 0x3bc   : > { %v1623_v19 = vpop.f32.mrf.mxu0  ;;  %v1636_v21 = vpop.f32.mrf.mxu1 }
 0x435   : > { %v1867_v22 = vpop.f32.mrf.mxu0  ;;  %v1880_v23 = vpop.f32.mrf.mxu1 }
 0x436   : > { %v1881_v24 = vadd.f32 %v1880_v23, %v1867_v22 }
 0x438   : > { %1885 = vst [vmem:[%s244_s24 + $0x8] sm:$0xff] %v1881_v24 }
 0x43a   : > { %v1841_v25 = vpop.f32.mrf.mxu2  ;;  %v1854_v26 = vpop.f32.mrf.mxu3 }
 0x43b   : > { %v1855_v27 = vadd.f32 %v1854_v26, %v1841_v25 }
 0x43d   : > { %1884 = vst [vmem:[%s244_s24] sm:$0xff] %v1855_v27  ;;  %v1869_v28 = vpop.f32.mrf.mxu0  ;;  %v1882_v30 = vpop.f32.mrf.mxu1 }
 0x442   : > { %v1843_v31 = vpop.f32.mrf.mxu2  ;;  %v1856_v32 = vpop.f32.mrf.mxu3 }
 0x443 PF: > { %s15_s18 = sadd.s32 1, %s2953_s18  }
 0x444   : > { %p12_p4 = scmp.ge.s32.totalorder %s15_s18, 4  }
 0x446   :  { %14 = sbr.rel (!%p12_p4) target bundleno = 1 (0x1), region = 73 }

</bundles_post_ra>
